<compile_context>
chip_gen: v7x
topology: tpu7x:2x2x1
jax: 0.10.0
libtpu: 0.0.40
codegen_flags: <defaults>
</compile_context>

<pallas_src>
import jax
import jax.numpy as jnp
from jax.experimental import pallas as pl
from jax.experimental.pallas import tpu as pltpu


def _make_down_kernel(Cin, Cmid, Cout, Hh, Wh, He, We):
    """Fused MaxPool2d(2) -> conv3x3+ReLU -> conv3x3+ReLU for one NCHW image.

    Activations are kept in VMEM in a zero-padded flat layout:
      padded image coords (hp, wp), hp in [0, Hh+1], wp in [0, Wh+1],
      flat index q = hp*(Wh+2) + wp, stored at scratch[:, G + q].
    The zero ring / guards implement the conv's padding=1, so each 3x3 tap is
    a plain contiguous window load (no roll/concat shifts, no border masks).
    """
    Wp = Wh + 2                        # padded row width
    Q = (Hh + 2) * Wp                  # padded-flat image length
    Qc = ((Q + 127) // 128) * 128      # lane-dense compute width
    G = Wh + 8                         # guard so every tap window stays in bounds
    Lpad = G + Qc + G                  # scratch width per channel
    _PREC = jax.lax.Precision.HIGHEST

    # Flat offsets of the nine 3x3 taps, k = 3*dy + dx (matches weight layout).
    tap_offs = [(dy - 1) * Wp + (dx - 1) for dy in range(3) for dx in range(3)]

    def conv3x3_relu(a_ref, w_ref, b_ref):
        # a_ref: (C, Lpad) zero-padded flat activation, w_ref: (O, 9*C), b_ref: (O, 1)
        taps = [a_ref[:, pl.ds(G + off, Qc)] for off in tap_offs]    # 9 x (C, Qc)
        im2col = jnp.concatenate(taps, axis=0)                       # (9*C, Qc)
        y = jnp.dot(w_ref[...], im2col,
                    preferred_element_type=jnp.float32, precision=_PREC)
        return jnp.maximum(y + b_ref[...], 0.0)                      # (O, Qc)

    def kernel(x_ref, w1_ref, b1_ref, w2_ref, b2_ref, o_ref, a1_ref, a2_ref):
        # Zero the padded scratches: the untouched ring/guard *is* the zero padding.
        a1_ref[...] = jnp.zeros_like(a1_ref)
        a2_ref[...] = jnp.zeros_like(a2_ref)

        # ---------------- MaxPool2d(2), fused ----------------
        x = x_ref[0].astype(jnp.float32)                   # (Cin, He*We) flat image
        L = (He - 1) * We
        rmax = jnp.maximum(x[:, :L], x[:, We:])            # vertical pair max
        cmax = jnp.maximum(rmax[:, :L - 1], rmax[:, 1:])   # full 2x2 max at even cols
        # pooled(i, j) = cmax[:, 2*i*We + 2*j]; gather the Hh rows ...
        rows = [cmax[:, 2 * i * We: 2 * i * We + (We - 1)] for i in range(Hh)]
        stack = jnp.concatenate(rows, axis=0)              # (Hh*Cin, We-1)
        # ... and compact the even columns with a 0/1 selection matmul (MXU).
        a_i = jax.lax.broadcasted_iota(jnp.int32, (We - 1, Wh), 0)
        j_i = jax.lax.broadcasted_iota(jnp.int32, (We - 1, Wh), 1)
        sel = (a_i == 2 * j_i).astype(jnp.float32)         # (We-1, Wh)
        pooled = jnp.dot(stack, sel,
                         preferred_element_type=jnp.float32, precision=_PREC)
        # Scatter the pooled rows into the zero-padded flat conv1 input.
        for i in range(Hh):
            a1_ref[:, pl.ds(G + (i + 1) * Wp + 1, Wh)] = (
                pooled[i * Cin:(i + 1) * Cin, :])

        # ---------------- conv1 3x3 + ReLU (stays in VMEM) ----------------
        y1 = conv3x3_relu(a1_ref, w1_ref, b1_ref)          # (Cmid, Qc)
        for i in range(Hh):
            base = (i + 1) * Wp + 1
            a2_ref[:, pl.ds(G + base, Wh)] = y1[:, base:base + Wh]

        # ---------------- conv2 3x3 + ReLU -> output ----------------
        y2 = conv3x3_relu(a2_ref, w2_ref, b2_ref)          # (Cout, Qc)
        for i in range(Hh):
            base = (i + 1) * Wp + 1
            o_ref[0, :, pl.ds(i * Wh, Wh)] = y2[:, base:base + Wh].astype(o_ref.dtype)

    return kernel, Lpad


@jax.jit
def down_forward(x, w1, b1, w2, b2):
    """Forward of Down(in_ch, out_ch, num_convs=2, batchnorm=False).

    x:  (N, Cin, H, W)
    w1: (Cmid, Cin, 3, 3)   b1: (Cmid,)
    w2: (Cout, Cmid, 3, 3)  b2: (Cout,)
    returns (N, Cout, H//2, W//2)
    """
    N, Cin, H0, W0 = x.shape
    Cmid, Cout = w1.shape[0], w2.shape[0]

    # MaxPool2d(2) floors odd spatial dims; crop to even (no-op when even).
    He, We = (H0 // 2) * 2, (W0 // 2) * 2
    x = x[:, :, :He, :We]
    Hh, Wh = He // 2, We // 2
    HW = Hh * Wh

    # Lane-dense flat view of each image (He*We on the lane axis). Single
    # input-side relayout; every intermediate after this stays in VMEM.
    x_flat = x.reshape(N, Cin, He * We)

    # PyTorch OIHW -> (O, 9*C) with column index (3*dy + dx)*C + c.
    w1_2d = jnp.transpose(w1, (0, 2, 3, 1)).reshape(Cmid, 9 * Cin).astype(jnp.float32)
    w2_2d = jnp.transpose(w2, (0, 2, 3, 1)).reshape(Cout, 9 * Cmid).astype(jnp.float32)
    b1_c = b1.reshape(Cmid, 1).astype(jnp.float32)
    b2_c = b2.reshape(Cout, 1).astype(jnp.float32)

    kernel, Lpad = _make_down_kernel(Cin, Cmid, Cout, Hh, Wh, He, We)

    out_flat = pl.pallas_call(
        kernel,
        out_shape=jax.ShapeDtypeStruct((N, Cout, HW), x.dtype),
        grid_spec=pltpu.PrefetchScalarGridSpec(
            num_scalar_prefetch=0,
            grid=(N,),                      # >= 2 steps -> both v7x TCs are used
            in_specs=[
                pl.BlockSpec((1, Cin, He * We), lambda n: (n, 0, 0)),
                pl.BlockSpec((Cmid, 9 * Cin), lambda n: (0, 0)),
                pl.BlockSpec((Cmid, 1), lambda n: (0, 0)),
                pl.BlockSpec((Cout, 9 * Cmid), lambda n: (0, 0)),
                pl.BlockSpec((Cout, 1), lambda n: (0, 0)),
            ],
            out_specs=pl.BlockSpec((1, Cout, HW), lambda n: (n, 0, 0)),
            scratch_shapes=[
                pltpu.VMEM((Cin, Lpad), jnp.float32),    # padded pooled image
                pltpu.VMEM((Cmid, Lpad), jnp.float32),   # padded conv1 activation
            ],
        ),
        compiler_params=pltpu.CompilerParams(
            dimension_semantics=("parallel",),
            vmem_limit_bytes=32 * 1024 * 1024,
        ),
    )(x_flat, w1_2d, b1_c, w2_2d, b2_c)

    return out_flat.reshape(N, Cout, Hh, Wh)


if __name__ == "__main__":
    # Down(in_channels=4, out_channels=8, num_convs=2, batchnorm=False)
    N, Cin, H, W = 2, 4, 16, 16
    Cout = 8  # mid_channels == out_channels == 8

    key = jax.random.PRNGKey(0)
    kx, k1, k2, k3, k4 = jax.random.split(key, 5)
    x = jax.random.normal(kx, (N, Cin, H, W), dtype=jnp.float32)

    def conv_init(kw, kb, o, i):
        # PyTorch Conv2d default init: U(-1/sqrt(fan_in), 1/sqrt(fan_in)), fan_in = i*3*3.
        bound = 1.0 / (i * 9) ** 0.5
        w = jax.random.uniform(kw, (o, i, 3, 3), minval=-bound, maxval=bound,
                               dtype=jnp.float32)
        b = jax.random.uniform(kb, (o,), minval=-bound, maxval=bound,
                               dtype=jnp.float32)
        return w, b

    w1, b1 = conv_init(k1, k2, Cout, Cin)
    w2, b2 = conv_init(k3, k4, Cout, Cout)

    y = down_forward(x, w1, b1, w2, b2)
    jax.block_until_ready(y)

    # Pure-JAX reference: maxpool(2) -> conv3x3+ReLU -> conv3x3+ReLU (NCHW).
    xp = x.reshape(N, Cin, H // 2, 2, W // 2, 2).max(axis=(3, 5))
    dn = ("NCHW", "OIHW", "NCHW")
    hp = jax.lax.Precision.HIGHEST
    r = jax.lax.conv_general_dilated(xp, w1, (1, 1), "SAME",
                                     dimension_numbers=dn, precision=hp)
    r = jnp.maximum(r + b1.reshape(1, -1, 1, 1), 0.0)
    r = jax.lax.conv_general_dilated(r, w2, (1, 1), "SAME",
                                     dimension_numbers=dn, precision=hp)
    r = jnp.maximum(r + b2.reshape(1, -1, 1, 1), 0.0)

    assert y.shape == (N, Cout, H // 2, W // 2), y.shape
    assert jnp.allclose(y, r, atol=1e-4, rtol=1e-4), \
        float(jnp.max(jnp.abs(y - r)))

    print("KERNEL_OK")
</pallas_src>

<mosaic_0001>
module attributes {stable_mosaic.version = 11 : i64} {
  func.func @kernel(%arg0: i32, %arg1: memref<1x4x256xf32, #tpu.memory_space<vmem>>, %arg2: memref<8x36xf32, #tpu.memory_space<vmem>>, %arg3: memref<8x1xf32, #tpu.memory_space<vmem>>, %arg4: memref<8x72xf32, #tpu.memory_space<vmem>>, %arg5: memref<8x1xf32, #tpu.memory_space<vmem>>, %arg6: memref<1x8x64xf32, #tpu.memory_space<vmem>>, %arg7: memref<4x160xf32, #tpu.memory_space<vmem>>, %arg8: memref<8x160xf32, #tpu.memory_space<vmem>>) attributes {dimension_semantics = [#tpu.dimension_semantics<parallel>], iteration_bounds = array<i64: 2>, scalar_prefetch = 0 : i64, scratch_operands = 2 : i64, tpu.core_type = #tpu.core_type<tc>, window_params = [{transform_indices = @transform_0, window_bounds = array<i64: 1, 4, 256>}, {pipeline_mode = #tpu.pipeline_mode<synchronous>, transform_indices = @transform_1, window_bounds = array<i64: 8, 36>}, {pipeline_mode = #tpu.pipeline_mode<synchronous>, transform_indices = @transform_2, window_bounds = array<i64: 8, 1>}, {pipeline_mode = #tpu.pipeline_mode<synchronous>, transform_indices = @transform_3, window_bounds = array<i64: 8, 72>}, {pipeline_mode = #tpu.pipeline_mode<synchronous>, transform_indices = @transform_4, window_bounds = array<i64: 8, 1>}, {transform_indices = @transform_5, window_bounds = array<i64: 1, 8, 64>}]} {
    %cst = arith.constant 0.000000e+00 : f32
    %0 = vector.broadcast %cst : f32 to vector<4x160xf32>
    %c0 = arith.constant 0 : index
    %c0_0 = arith.constant 0 : index
    %1 = vector.load %arg7[%c0, %c0_0] : memref<4x160xf32, #tpu.memory_space<vmem>>, vector<4x160xf32>
    tpu.vector_store %arg7[%c0, %c0_0], %0 {strides = array<i32>} : memref<4x160xf32, #tpu.memory_space<vmem>>, vector<4x160xf32>,
    %cst_1 = arith.constant 0.000000e+00 : f32
    %2 = vector.broadcast %cst_1 : f32 to vector<8x160xf32>
    %c0_2 = arith.constant 0 : index
    %c0_3 = arith.constant 0 : index
    %3 = vector.load %arg8[%c0_2, %c0_3] : memref<8x160xf32, #tpu.memory_space<vmem>>, vector<8x160xf32>
    tpu.vector_store %arg8[%c0_2, %c0_3], %2 {strides = array<i32>} : memref<8x160xf32, #tpu.memory_space<vmem>>, vector<8x160xf32>,
    %c0_4 = arith.constant 0 : index
    %c0_5 = arith.constant 0 : index
    %c0_6 = arith.constant 0 : index
    %4 = vector.load %arg1[%c0_4, %c0_5, %c0_6] : memref<1x4x256xf32, #tpu.memory_space<vmem>>, vector<1x4x256xf32>
    %5 = vector.shape_cast %4 : vector<1x4x256xf32> to vector<4x256xf32>
    %6 = vector.extract_strided_slice %5 {offsets = [0, 0], sizes = [4, 240], strides = [1, 1]} : vector<4x256xf32> to vector<4x240xf32>
    %7 = vector.extract_strided_slice %5 {offsets = [0, 16], sizes = [4, 240], strides = [1, 1]} : vector<4x256xf32> to vector<4x240xf32>
    %8 = arith.maximumf %6, %7 : vector<4x240xf32>
    %9 = vector.extract_strided_slice %8 {offsets = [0, 0], sizes = [4, 239], strides = [1, 1]} : vector<4x240xf32> to vector<4x239xf32>
    %10 = vector.extract_strided_slice %8 {offsets = [0, 1], sizes = [4, 239], strides = [1, 1]} : vector<4x240xf32> to vector<4x239xf32>
    %11 = arith.maximumf %9, %10 : vector<4x239xf32>
    %12 = vector.extract_strided_slice %11 {offsets = [0, 0], sizes = [4, 15], strides = [1, 1]} : vector<4x239xf32> to vector<4x15xf32>
    %13 = vector.extract_strided_slice %11 {offsets = [0, 32], sizes = [4, 15], strides = [1, 1]} : vector<4x239xf32> to vector<4x15xf32>
    %14 = vector.extract_strided_slice %11 {offsets = [0, 64], sizes = [4, 15], strides = [1, 1]} : vector<4x239xf32> to vector<4x15xf32>
    %15 = vector.extract_strided_slice %11 {offsets = [0, 96], sizes = [4, 15], strides = [1, 1]} : vector<4x239xf32> to vector<4x15xf32>
    %16 = vector.extract_strided_slice %11 {offsets = [0, 128], sizes = [4, 15], strides = [1, 1]} : vector<4x239xf32> to vector<4x15xf32>
    %17 = vector.extract_strided_slice %11 {offsets = [0, 160], sizes = [4, 15], strides = [1, 1]} : vector<4x239xf32> to vector<4x15xf32>
    %18 = vector.extract_strided_slice %11 {offsets = [0, 192], sizes = [4, 15], strides = [1, 1]} : vector<4x239xf32> to vector<4x15xf32>
    %19 = vector.extract_strided_slice %11 {offsets = [0, 224], sizes = [4, 15], strides = [1, 1]} : vector<4x239xf32> to vector<4x15xf32>
    %20 = tpu.concatenate %12, %13, %14, %15, %16, %17, %18, %19 in 0 : vector<4x15xf32>, vector<4x15xf32>, vector<4x15xf32>, vector<4x15xf32>, vector<4x15xf32>, vector<4x15xf32>, vector<4x15xf32>, vector<4x15xf32> -> vector<32x15xf32>
    %21 = tpu.iota {dimensions = array<i32: 0>} : vector<15x8xi32>
    %22 = tpu.iota {dimensions = array<i32: 1>} : vector<15x8xi32>
    %c2_i32 = arith.constant 2 : i32
    %23 = vector.broadcast %c2_i32 : i32 to vector<15x8xi32>
    %24 = arith.muli %23, %22 : vector<15x8xi32>
    %25 = arith.cmpi eq, %21, %24 : vector<15x8xi32>
    %26 = arith.extui %25 : vector<15x8xi1> to vector<15x8xi32>
    %27 = arith.sitofp %26 : vector<15x8xi32> to vector<15x8xf32>
    %cst_7 = arith.constant dense<0.000000e+00> : vector<32x8xf32>
    %28 = tpu.matmul %20, %27, %cst_7 {dimension_numbers = #tpu.dot_dimension_numbers<[1], [0], [0], [1], [0, 0, 1, 1], [], []>, precision = #tpu.contract_precision<fp32>} : vector<32x15xf32>, vector<15x8xf32>, vector<32x8xf32> -> vector<32x8xf32>
    %29 = vector.extract_strided_slice %28 {offsets = [0, 0], sizes = [4, 8], strides = [1, 1]} : vector<32x8xf32> to vector<4x8xf32>
    %c0_8 = arith.constant 0 : index
    %c27 = arith.constant 27 : index
    %30 = vector.load %arg7[%c0_8, %c27] : memref<4x160xf32, #tpu.memory_space<vmem>>, vector<4x8xf32>
    tpu.vector_store %arg7[%c0_8, %c27], %29 {strides = array<i32>} : memref<4x160xf32, #tpu.memory_space<vmem>>, vector<4x8xf32>,
    %31 = vector.extract_strided_slice %28 {offsets = [4, 0], sizes = [4, 8], strides = [1, 1]} : vector<32x8xf32> to vector<4x8xf32>
    %c0_9 = arith.constant 0 : index
    %c37 = arith.constant 37 : index
    %32 = vector.load %arg7[%c0_9, %c37] : memref<4x160xf32, #tpu.memory_space<vmem>>, vector<4x8xf32>
    tpu.vector_store %arg7[%c0_9, %c37], %31 {strides = array<i32>} : memref<4x160xf32, #tpu.memory_space<vmem>>, vector<4x8xf32>,
    %33 = vector.extract_strided_slice %28 {offsets = [8, 0], sizes = [4, 8], strides = [1, 1]} : vector<32x8xf32> to vector<4x8xf32>
    %c0_10 = arith.constant 0 : index
    %c47 = arith.constant 47 : index
    %34 = vector.load %arg7[%c0_10, %c47] : memref<4x160xf32, #tpu.memory_space<vmem>>, vector<4x8xf32>
    tpu.vector_store %arg7[%c0_10, %c47], %33 {strides = array<i32>} : memref<4x160xf32, #tpu.memory_space<vmem>>, vector<4x8xf32>,
    %35 = vector.extract_strided_slice %28 {offsets = [12, 0], sizes = [4, 8], strides = [1, 1]} : vector<32x8xf32> to vector<4x8xf32>
    %c0_11 = arith.constant 0 : index
    %c57 = arith.constant 57 : index
    %36 = vector.load %arg7[%c0_11, %c57] : memref<4x160xf32, #tpu.memory_space<vmem>>, vector<4x8xf32>
    tpu.vector_store %arg7[%c0_11, %c57], %35 {strides = array<i32>} : memref<4x160xf32, #tpu.memory_space<vmem>>, vector<4x8xf32>,
    %37 = vector.extract_strided_slice %28 {offsets = [16, 0], sizes = [4, 8], strides = [1, 1]} : vector<32x8xf32> to vector<4x8xf32>
    %c0_12 = arith.constant 0 : index
    %c67 = arith.constant 67 : index
    %38 = vector.load %arg7[%c0_12, %c67] : memref<4x160xf32, #tpu.memory_space<vmem>>, vector<4x8xf32>
    tpu.vector_store %arg7[%c0_12, %c67], %37 {strides = array<i32>} : memref<4x160xf32, #tpu.memory_space<vmem>>, vector<4x8xf32>,
    %39 = vector.extract_strided_slice %28 {offsets = [20, 0], sizes = [4, 8], strides = [1, 1]} : vector<32x8xf32> to vector<4x8xf32>
    %c0_13 = arith.constant 0 : index
    %c77 = arith.constant 77 : index
    %40 = vector.load %arg7[%c0_13, %c77] : memref<4x160xf32, #tpu.memory_space<vmem>>, vector<4x8xf32>
    tpu.vector_store %arg7[%c0_13, %c77], %39 {strides = array<i32>} : memref<4x160xf32, #tpu.memory_space<vmem>>, vector<4x8xf32>,
    %41 = vector.extract_strided_slice %28 {offsets = [24, 0], sizes = [4, 8], strides = [1, 1]} : vector<32x8xf32> to vector<4x8xf32>
    %c0_14 = arith.constant 0 : index
    %c87 = arith.constant 87 : index
    %42 = vector.load %arg7[%c0_14, %c87] : memref<4x160xf32, #tpu.memory_space<vmem>>, vector<4x8xf32>
    tpu.vector_store %arg7[%c0_14, %c87], %41 {strides = array<i32>} : memref<4x160xf32, #tpu.memory_space<vmem>>, vector<4x8xf32>,
    %43 = vector.extract_strided_slice %28 {offsets = [28, 0], sizes = [4, 8], strides = [1, 1]} : vector<32x8xf32> to vector<4x8xf32>
    %c0_15 = arith.constant 0 : index
    %c97 = arith.constant 97 : index
    %44 = vector.load %arg7[%c0_15, %c97] : memref<4x160xf32, #tpu.memory_space<vmem>>, vector<4x8xf32>
    tpu.vector_store %arg7[%c0_15, %c97], %43 {strides = array<i32>} : memref<4x160xf32, #tpu.memory_space<vmem>>, vector<4x8xf32>,
    %c0_16 = arith.constant 0 : index
    %c5 = arith.constant 5 : index
    %45 = vector.load %arg7[%c0_16, %c5] : memref<4x160xf32, #tpu.memory_space<vmem>>, vector<4x128xf32>
    %c0_17 = arith.constant 0 : index
    %c6 = arith.constant 6 : index
    %46 = vector.load %arg7[%c0_17, %c6] : memref<4x160xf32, #tpu.memory_space<vmem>>, vector<4x128xf32>
    %c0_18 = arith.constant 0 : index
    %c7 = arith.constant 7 : index
    %47 = vector.load %arg7[%c0_18, %c7] : memref<4x160xf32, #tpu.memory_space<vmem>>, vector<4x128xf32>
    %c0_19 = arith.constant 0 : index
    %c15 = arith.constant 15 : index
    %48 = vector.load %arg7[%c0_19, %c15] : memref<4x160xf32, #tpu.memory_space<vmem>>, vector<4x128xf32>
    %c0_20 = arith.constant 0 : index
    %c16 = arith.constant 16 : index
    %49 = vector.load %arg7[%c0_20, %c16] : memref<4x160xf32, #tpu.memory_space<vmem>>, vector<4x128xf32>
    %c0_21 = arith.constant 0 : index
    %c17 = arith.constant 17 : index
    %50 = vector.load %arg7[%c0_21, %c17] : memref<4x160xf32, #tpu.memory_space<vmem>>, vector<4x128xf32>
    %c0_22 = arith.constant 0 : index
    %c25 = arith.constant 25 : index
    %51 = vector.load %arg7[%c0_22, %c25] : memref<4x160xf32, #tpu.memory_space<vmem>>, vector<4x128xf32>
    %c0_23 = arith.constant 0 : index
    %c26 = arith.constant 26 : index
    %52 = vector.load %arg7[%c0_23, %c26] : memref<4x160xf32, #tpu.memory_space<vmem>>, vector<4x128xf32>
    %c0_24 = arith.constant 0 : index
    %c27_25 = arith.constant 27 : index
    %53 = vector.load %arg7[%c0_24, %c27_25] : memref<4x160xf32, #tpu.memory_space<vmem>>, vector<4x128xf32>
    %54 = tpu.concatenate %45, %46, %47, %48, %49, %50, %51, %52, %53 in 0 : vector<4x128xf32>, vector<4x128xf32>, vector<4x128xf32>, vector<4x128xf32>, vector<4x128xf32>, vector<4x128xf32>, vector<4x128xf32>, vector<4x128xf32>, vector<4x128xf32> -> vector<36x128xf32>
    %c0_26 = arith.constant 0 : index
    %c0_27 = arith.constant 0 : index
    %55 = vector.load %arg2[%c0_26, %c0_27] : memref<8x36xf32, #tpu.memory_space<vmem>>, vector<8x36xf32>
    %cst_28 = arith.constant dense<0.000000e+00> : vector<8x128xf32>
    %56 = tpu.matmul %55, %54, %cst_28 {dimension_numbers = #tpu.dot_dimension_numbers<[1], [0], [0], [1], [0, 0, 1, 1], [], []>, precision = #tpu.contract_precision<fp32>} : vector<8x36xf32>, vector<36x128xf32>, vector<8x128xf32> -> vector<8x128xf32>
    %c0_29 = arith.constant 0 : index
    %c0_30 = arith.constant 0 : index
    %57 = vector.load %arg3[%c0_29, %c0_30] : memref<8x1xf32, #tpu.memory_space<vmem>>, vector<8x1xf32>
    %58 = vector.broadcast %57 : vector<8x1xf32> to vector<8x128xf32>
    %59 = arith.addf %56, %58 : vector<8x128xf32>
    %cst_31 = arith.constant 0.000000e+00 : f32
    %60 = vector.broadcast %cst_31 : f32 to vector<8x128xf32>
    %61 = arith.maximumf %59, %60 : vector<8x128xf32>
    %62 = vector.extract_strided_slice %61 {offsets = [0, 11], sizes = [8, 8], strides = [1, 1]} : vector<8x128xf32> to vector<8x8xf32>
    %c0_32 = arith.constant 0 : index
    %c27_33 = arith.constant 27 : index
    %63 = vector.load %arg8[%c0_32, %c27_33] : memref<8x160xf32, #tpu.memory_space<vmem>>, vector<8x8xf32>
    tpu.vector_store %arg8[%c0_32, %c27_33], %62 {strides = array<i32>} : memref<8x160xf32, #tpu.memory_space<vmem>>, vector<8x8xf32>,
    %64 = vector.extract_strided_slice %61 {offsets = [0, 21], sizes = [8, 8], strides = [1, 1]} : vector<8x128xf32> to vector<8x8xf32>
    %c0_34 = arith.constant 0 : index
    %c37_35 = arith.constant 37 : index
    %65 = vector.load %arg8[%c0_34, %c37_35] : memref<8x160xf32, #tpu.memory_space<vmem>>, vector<8x8xf32>
    tpu.vector_store %arg8[%c0_34, %c37_35], %64 {strides = array<i32>} : memref<8x160xf32, #tpu.memory_space<vmem>>, vector<8x8xf32>,
    %66 = vector.extract_strided_slice %61 {offsets = [0, 31], sizes = [8, 8], strides = [1, 1]} : vector<8x128xf32> to vector<8x8xf32>
    %c0_36 = arith.constant 0 : index
    %c47_37 = arith.constant 47 : index
    %67 = vector.load %arg8[%c0_36, %c47_37] : memref<8x160xf32, #tpu.memory_space<vmem>>, vector<8x8xf32>
    tpu.vector_store %arg8[%c0_36, %c47_37], %66 {strides = array<i32>} : memref<8x160xf32, #tpu.memory_space<vmem>>, vector<8x8xf32>,
    %68 = vector.extract_strided_slice %61 {offsets = [0, 41], sizes = [8, 8], strides = [1, 1]} : vector<8x128xf32> to vector<8x8xf32>
    %c0_38 = arith.constant 0 : index
    %c57_39 = arith.constant 57 : index
    %69 = vector.load %arg8[%c0_38, %c57_39] : memref<8x160xf32, #tpu.memory_space<vmem>>, vector<8x8xf32>
    tpu.vector_store %arg8[%c0_38, %c57_39], %68 {strides = array<i32>} : memref<8x160xf32, #tpu.memory_space<vmem>>, vector<8x8xf32>,
    %70 = vector.extract_strided_slice %61 {offsets = [0, 51], sizes = [8, 8], strides = [1, 1]} : vector<8x128xf32> to vector<8x8xf32>
    %c0_40 = arith.constant 0 : index
    %c67_41 = arith.constant 67 : index
    %71 = vector.load %arg8[%c0_40, %c67_41] : memref<8x160xf32, #tpu.memory_space<vmem>>, vector<8x8xf32>
    tpu.vector_store %arg8[%c0_40, %c67_41], %70 {strides = array<i32>} : memref<8x160xf32, #tpu.memory_space<vmem>>, vector<8x8xf32>,
    %72 = vector.extract_strided_slice %61 {offsets = [0, 61], sizes = [8, 8], strides = [1, 1]} : vector<8x128xf32> to vector<8x8xf32>
    %c0_42 = arith.constant 0 : index
    %c77_43 = arith.constant 77 : index
    %73 = vector.load %arg8[%c0_42, %c77_43] : memref<8x160xf32, #tpu.memory_space<vmem>>, vector<8x8xf32>
    tpu.vector_store %arg8[%c0_42, %c77_43], %72 {strides = array<i32>} : memref<8x160xf32, #tpu.memory_space<vmem>>, vector<8x8xf32>,
    %74 = vector.extract_strided_slice %61 {offsets = [0, 71], sizes = [8, 8], strides = [1, 1]} : vector<8x128xf32> to vector<8x8xf32>
    %c0_44 = arith.constant 0 : index
    %c87_45 = arith.constant 87 : index
    %75 = vector.load %arg8[%c0_44, %c87_45] : memref<8x160xf32, #tpu.memory_space<vmem>>, vector<8x8xf32>
    tpu.vector_store %arg8[%c0_44, %c87_45], %74 {strides = array<i32>} : memref<8x160xf32, #tpu.memory_space<vmem>>, vector<8x8xf32>,
    %76 = vector.extract_strided_slice %61 {offsets = [0, 81], sizes = [8, 8], strides = [1, 1]} : vector<8x128xf32> to vector<8x8xf32>
    %c0_46 = arith.constant 0 : index
    %c97_47 = arith.constant 97 : index
    %77 = vector.load %arg8[%c0_46, %c97_47] : memref<8x160xf32, #tpu.memory_space<vmem>>, vector<8x8xf32>
    tpu.vector_store %arg8[%c0_46, %c97_47], %76 {strides = array<i32>} : memref<8x160xf32, #tpu.memory_space<vmem>>, vector<8x8xf32>,
    %c0_48 = arith.constant 0 : index
    %c5_49 = arith.constant 5 : index
    %78 = vector.load %arg8[%c0_48, %c5_49] : memref<8x160xf32, #tpu.memory_space<vmem>>, vector<8x128xf32>
    %c0_50 = arith.constant 0 : index
    %c6_51 = arith.constant 6 : index
    %79 = vector.load %arg8[%c0_50, %c6_51] : memref<8x160xf32, #tpu.memory_space<vmem>>, vector<8x128xf32>
    %c0_52 = arith.constant 0 : index
    %c7_53 = arith.constant 7 : index
    %80 = vector.load %arg8[%c0_52, %c7_53] : memref<8x160xf32, #tpu.memory_space<vmem>>, vector<8x128xf32>
    %c0_54 = arith.constant 0 : index
    %c15_55 = arith.constant 15 : index
    %81 = vector.load %arg8[%c0_54, %c15_55] : memref<8x160xf32, #tpu.memory_space<vmem>>, vector<8x128xf32>
    %c0_56 = arith.constant 0 : index
    %c16_57 = arith.constant 16 : index
    %82 = vector.load %arg8[%c0_56, %c16_57] : memref<8x160xf32, #tpu.memory_space<vmem>>, vector<8x128xf32>
    %c0_58 = arith.constant 0 : index
    %c17_59 = arith.constant 17 : index
    %83 = vector.load %arg8[%c0_58, %c17_59] : memref<8x160xf32, #tpu.memory_space<vmem>>, vector<8x128xf32>
    %c0_60 = arith.constant 0 : index
    %c25_61 = arith.constant 25 : index
    %84 = vector.load %arg8[%c0_60, %c25_61] : memref<8x160xf32, #tpu.memory_space<vmem>>, vector<8x128xf32>
    %c0_62 = arith.constant 0 : index
    %c26_63 = arith.constant 26 : index
    %85 = vector.load %arg8[%c0_62, %c26_63] : memref<8x160xf32, #tpu.memory_space<vmem>>, vector<8x128xf32>
    %c0_64 = arith.constant 0 : index
    %c27_65 = arith.constant 27 : index
    %86 = vector.load %arg8[%c0_64, %c27_65] : memref<8x160xf32, #tpu.memory_space<vmem>>, vector<8x128xf32>
    %87 = tpu.concatenate %78, %79, %80, %81, %82, %83, %84, %85, %86 in 0 : vector<8x128xf32>, vector<8x128xf32>, vector<8x128xf32>, vector<8x128xf32>, vector<8x128xf32>, vector<8x128xf32>, vector<8x128xf32>, vector<8x128xf32>, vector<8x128xf32> -> vector<72x128xf32>
    %c0_66 = arith.constant 0 : index
    %c0_67 = arith.constant 0 : index
    %88 = vector.load %arg4[%c0_66, %c0_67] : memref<8x72xf32, #tpu.memory_space<vmem>>, vector<8x72xf32>
    %cst_68 = arith.constant dense<0.000000e+00> : vector<8x128xf32>
    %89 = tpu.matmul %88, %87, %cst_68 {dimension_numbers = #tpu.dot_dimension_numbers<[1], [0], [0], [1], [0, 0, 1, 1], [], []>, precision = #tpu.contract_precision<fp32>} : vector<8x72xf32>, vector<72x128xf32>, vector<8x128xf32> -> vector<8x128xf32>
    %c0_69 = arith.constant 0 : index
    %c0_70 = arith.constant 0 : index
    %90 = vector.load %arg5[%c0_69, %c0_70] : memref<8x1xf32, #tpu.memory_space<vmem>>, vector<8x1xf32>
    %91 = vector.broadcast %90 : vector<8x1xf32> to vector<8x128xf32>
    %92 = arith.addf %89, %91 : vector<8x128xf32>
    %cst_71 = arith.constant 0.000000e+00 : f32
    %93 = vector.broadcast %cst_71 : f32 to vector<8x128xf32>
    %94 = arith.maximumf %92, %93 : vector<8x128xf32>
    %95 = vector.extract_strided_slice %94 {offsets = [0, 11], sizes = [8, 8], strides = [1, 1]} : vector<8x128xf32> to vector<8x8xf32>
    %c0_72 = arith.constant 0 : index
    %c0_73 = arith.constant 0 : index
    %c0_74 = arith.constant 0 : index
    %96 = vector.load %arg6[%c0_72, %c0_73, %c0_74] : memref<1x8x64xf32, #tpu.memory_space<vmem>>, vector<1x8x8xf32>
    %97 = vector.shape_cast %96 : vector<1x8x8xf32> to vector<8x8xf32>
    %98 = vector.shape_cast %95 : vector<8x8xf32> to vector<1x8x8xf32>
    tpu.vector_store %arg6[%c0_72, %c0_73, %c0_74], %98 {strides = array<i32>} : memref<1x8x64xf32, #tpu.memory_space<vmem>>, vector<1x8x8xf32>,
    %99 = vector.extract_strided_slice %94 {offsets = [0, 21], sizes = [8, 8], strides = [1, 1]} : vector<8x128xf32> to vector<8x8xf32>
    %c0_75 = arith.constant 0 : index
    %c0_76 = arith.constant 0 : index
    %c8 = arith.constant 8 : index
    %100 = vector.load %arg6[%c0_75, %c0_76, %c8] : memref<1x8x64xf32, #tpu.memory_space<vmem>>, vector<1x8x8xf32>
    %101 = vector.shape_cast %100 : vector<1x8x8xf32> to vector<8x8xf32>
    %102 = vector.shape_cast %99 : vector<8x8xf32> to vector<1x8x8xf32>
    tpu.vector_store %arg6[%c0_75, %c0_76, %c8], %102 {strides = array<i32>} : memref<1x8x64xf32, #tpu.memory_space<vmem>>, vector<1x8x8xf32>,
    %103 = vector.extract_strided_slice %94 {offsets = [0, 31], sizes = [8, 8], strides = [1, 1]} : vector<8x128xf32> to vector<8x8xf32>
    %c0_77 = arith.constant 0 : index
    %c0_78 = arith.constant 0 : index
    %c16_79 = arith.constant 16 : index
    %104 = vector.load %arg6[%c0_77, %c0_78, %c16_79] : memref<1x8x64xf32, #tpu.memory_space<vmem>>, vector<1x8x8xf32>
    %105 = vector.shape_cast %104 : vector<1x8x8xf32> to vector<8x8xf32>
    %106 = vector.shape_cast %103 : vector<8x8xf32> to vector<1x8x8xf32>
    tpu.vector_store %arg6[%c0_77, %c0_78, %c16_79], %106 {strides = array<i32>} : memref<1x8x64xf32, #tpu.memory_space<vmem>>, vector<1x8x8xf32>,
    %107 = vector.extract_strided_slice %94 {offsets = [0, 41], sizes = [8, 8], strides = [1, 1]} : vector<8x128xf32> to vector<8x8xf32>
    %c0_80 = arith.constant 0 : index
    %c0_81 = arith.constant 0 : index
    %c24 = arith.constant 24 : index
    %108 = vector.load %arg6[%c0_80, %c0_81, %c24] : memref<1x8x64xf32, #tpu.memory_space<vmem>>, vector<1x8x8xf32>
    %109 = vector.shape_cast %108 : vector<1x8x8xf32> to vector<8x8xf32>
    %110 = vector.shape_cast %107 : vector<8x8xf32> to vector<1x8x8xf32>
    tpu.vector_store %arg6[%c0_80, %c0_81, %c24], %110 {strides = array<i32>} : memref<1x8x64xf32, #tpu.memory_space<vmem>>, vector<1x8x8xf32>,
    %111 = vector.extract_strided_slice %94 {offsets = [0, 51], sizes = [8, 8], strides = [1, 1]} : vector<8x128xf32> to vector<8x8xf32>
    %c0_82 = arith.constant 0 : index
    %c0_83 = arith.constant 0 : index
    %c32 = arith.constant 32 : index
    %112 = vector.load %arg6[%c0_82, %c0_83, %c32] : memref<1x8x64xf32, #tpu.memory_space<vmem>>, vector<1x8x8xf32>
    %113 = vector.shape_cast %112 : vector<1x8x8xf32> to vector<8x8xf32>
    %114 = vector.shape_cast %111 : vector<8x8xf32> to vector<1x8x8xf32>
    tpu.vector_store %arg6[%c0_82, %c0_83, %c32], %114 {strides = array<i32>} : memref<1x8x64xf32, #tpu.memory_space<vmem>>, vector<1x8x8xf32>,
    %115 = vector.extract_strided_slice %94 {offsets = [0, 61], sizes = [8, 8], strides = [1, 1]} : vector<8x128xf32> to vector<8x8xf32>
    %c0_84 = arith.constant 0 : index
    %c0_85 = arith.constant 0 : index
    %c40 = arith.constant 40 : index
    %116 = vector.load %arg6[%c0_84, %c0_85, %c40] : memref<1x8x64xf32, #tpu.memory_space<vmem>>, vector<1x8x8xf32>
    %117 = vector.shape_cast %116 : vector<1x8x8xf32> to vector<8x8xf32>
    %118 = vector.shape_cast %115 : vector<8x8xf32> to vector<1x8x8xf32>
    tpu.vector_store %arg6[%c0_84, %c0_85, %c40], %118 {strides = array<i32>} : memref<1x8x64xf32, #tpu.memory_space<vmem>>, vector<1x8x8xf32>,
    %119 = vector.extract_strided_slice %94 {offsets = [0, 71], sizes = [8, 8], strides = [1, 1]} : vector<8x128xf32> to vector<8x8xf32>
    %c0_86 = arith.constant 0 : index
    %c0_87 = arith.constant 0 : index
    %c48 = arith.constant 48 : index
    %120 = vector.load %arg6[%c0_86, %c0_87, %c48] : memref<1x8x64xf32, #tpu.memory_space<vmem>>, vector<1x8x8xf32>
    %121 = vector.shape_cast %120 : vector<1x8x8xf32> to vector<8x8xf32>
    %122 = vector.shape_cast %119 : vector<8x8xf32> to vector<1x8x8xf32>
    tpu.vector_store %arg6[%c0_86, %c0_87, %c48], %122 {strides = array<i32>} : memref<1x8x64xf32, #tpu.memory_space<vmem>>, vector<1x8x8xf32>,
    %123 = vector.extract_strided_slice %94 {offsets = [0, 81], sizes = [8, 8], strides = [1, 1]} : vector<8x128xf32> to vector<8x8xf32>
    %c0_88 = arith.constant 0 : index
    %c0_89 = arith.constant 0 : index
    %c56 = arith.constant 56 : index
    %124 = vector.load %arg6[%c0_88, %c0_89, %c56] : memref<1x8x64xf32, #tpu.memory_space<vmem>>, vector<1x8x8xf32>
    %125 = vector.shape_cast %124 : vector<1x8x8xf32> to vector<8x8xf32>
    %126 = vector.shape_cast %123 : vector<8x8xf32> to vector<1x8x8xf32>
    tpu.vector_store %arg6[%c0_88, %c0_89, %c56], %126 {strides = array<i32>} : memref<1x8x64xf32, #tpu.memory_space<vmem>>, vector<1x8x8xf32>,
    return
  }
  func.func @transform_0(%arg0: i32) -> (i32, i32, i32) {
    %c0_i32 = arith.constant 0 : i32
    %c0_i32_0 = arith.constant 0 : i32
    %c0_i32_1 = arith.constant 0 : i32
    return %arg0, %c0_i32, %c0_i32_0 : i32, i32, i32
  }
  func.func @transform_1(%arg0: i32) -> (i32, i32) {
    %c0_i32 = arith.constant 0 : i32
    %c0_i32_0 = arith.constant 0 : i32
    %c0_i32_1 = arith.constant 0 : i32
    return %c0_i32, %c0_i32_0 : i32, i32
  }
  func.func @transform_2(%arg0: i32) -> (i32, i32) {
    %c0_i32 = arith.constant 0 : i32
    %c0_i32_0 = arith.constant 0 : i32
    %c0_i32_1 = arith.constant 0 : i32
    return %c0_i32, %c0_i32_0 : i32, i32
  }
  func.func @transform_3(%arg0: i32) -> (i32, i32) {
    %c0_i32 = arith.constant 0 : i32
    %c0_i32_0 = arith.constant 0 : i32
    %c0_i32_1 = arith.constant 0 : i32
    return %c0_i32, %c0_i32_0 : i32, i32
  }
  func.func @transform_4(%arg0: i32) -> (i32, i32) {
    %c0_i32 = arith.constant 0 : i32
    %c0_i32_0 = arith.constant 0 : i32
    %c0_i32_1 = arith.constant 0 : i32
    return %c0_i32, %c0_i32_0 : i32, i32
  }
  func.func @transform_5(%arg0: i32) -> (i32, i32, i32) {
    %c0_i32 = arith.constant 0 : i32
    %c0_i32_0 = arith.constant 0 : i32
    %c0_i32_1 = arith.constant 0 : i32
    return %arg0, %c0_i32, %c0_i32_0 : i32, i32, i32
  }
}

</mosaic_0001>

<bundles_post_ra>
// kernel: down_forward.1
= control target key start
LH: loop header
LB: loop body
LE: loop exit
PB: predicated region body
PF: predicated region fallthrough
CT: control target
= control target key end

     0   :  { %s3046_s18 = smov 0   ;;  %s3446_s0 = inlined_call_operand.vmem [shape: f32[2,4,256], index: 0, kind: input, shape index: {}]   ;;  %s3447_s1 = inlined_call_operand.vmem [shape: f32[8,36], index: 1, kind: input, shape index: {}]   ;;  %s3448_s2 = inlined_call_operand.vmem [shape: f32[8,1], index: 2, kind: input, shape index: {}]   ;;  %s3449_s3 = inlined_call_operand.vmem [shape: f32[8,72], index: 3, kind: input, shape index: {}]   ;;  %s3450_s4 = inlined_call_operand.vmem [shape: f32[8,1], index: 4, kind: input, shape index: {}]   ;;  %s3451_s5 = inlined_call_operand.vmem [shape: f32[2,8,64], index: 5, kind: output, shape index: {}]  }
   0x1 LB: > { %s2336_s19 = sadd.s32 4294967295, %s2981_s18   ;;  %p2340_p0 = scmp.ge.s32.totalorder %s2981_s18, 1  ;;  %s2981_s18 = sphi %s3046_s18, %s15_s18  }
   0x2   : > { %p187_p1 = scmp.lt.s32.totalorder %s2981_s18, 3 }
   0x4   : > { %p188_p2 = pnand %p2340_p0, %p187_p1 }
   0x5   : > { %p214_p3 = scmp.lt.s32.totalorder (!%p188_p2), %s2336_s19, 1  ;;  %s2983_s24 = smov (!%p188_p2), 112   ;;  %vm235_vm0 = vcmask (!%p188_p2), 916480   ;;  %v273_v5 = vlaneseq (!%p188_p2)  ;;  %v2985_v11 = vmov (!%p188_p2), 0.0   ;;  %vm298_vm3 = vcmask (!%p188_p2), 1046528  }
   0x6   : > { %191 = sbr.rel (%p188_p2) target bundleno = 2095 (0x82f), region = 40  ;;  %s2984_s25 = smov (!%p188_p2), 127   ;;  %227 = vst [vmem:[#allocation3] sm:$0xff] (!%p188_p2), %v2985_v11  ;;  %vm243_vm4 = vcmask (!%p188_p2), 1039360   ;;  %v2986_v26 = vmov (!%p188_p2), 1.0   ;;  %vm223_vm6 = vcmask (!%p188_p2), 1043456  }
   0x7   : > { %v274_v6 = vshrl.u32 (!%p188_p2), %v273_v5, 7  ;;  %v277_v7 = vand.u32 (!%p188_p2), 127, %v273_v5  ;;  %s2987_s26 = smov (!%p188_p2), 64   ;;  %s2988_s27 = smov (!%p188_p2), 32   ;;  %vm285_vm7 = vcmask (!%p188_p2), 121856   ;;  %vm224_vm8 = vcmask (!%p188_p2), 261124  }
   0x8   : > { %s2989_s28 = smov (!%p188_p2), 96   ;;  %vm225_vm9 = vmor (!%p188_p2), %vm224_vm8, %vm223_vm6  ;;  %s2990_s29 = smov (!%p188_p2), 47   ;;  %vm894_vm10 = vcmask (!%p188_p2), 281816   ;;  %vm900_vm11 = vcmask (!%p188_p2), 363816   ;;  %vm906_vm12 = vcmask (!%p188_p2), 445816   ;;  %vm912_vm13 = vcmask (!%p188_p2), 527816  }
   0x9   : > { %v275_v8 = vadd.s32 (!%p188_p2), 8, %v274_v6  ;;  %v278_v9 = vmul.u32 (!%p188_p2), 2, %v277_v7  ;;  %226 = vst.msk [vmem:[#allocation2] sm:$0xff] (!%p188_p2), %vm225_vm9, %v2985_v11  ;;  %s2991_s30 = smov (!%p188_p2), 57   ;;  %s2992_s6 = smov (!%p188_p2), 27   ;;  %vm918_vm14 = vcmask (!%p188_p2), 609816  }
   0xa   : > { %s2993_s7 = smov (!%p188_p2), 37   ;;  %s2994_s8 = smov (!%p188_p2), 67   ;;  %vm924_vm15 = vcmask (!%p188_p2), 691816   ;;  %vm986_vm8 = vcmask (!%p188_p2), 883712   ;;  %vm994_vm9 = vcmask (!%p188_p2), 875520  }
   0xb   : > { %vm280_vm1 = vcmp.eq.s32.totalorder (!%p188_p2), %v275_v8, %v278_v9  ;;  %vm3063_vm2 = vcmp.eq.s32.totalorder (!%p188_p2), %v274_v6, %v278_v9  ;;  %s2995_s9 = smov (!%p188_p2), 77   ;;  %s2996_s10 = smov (!%p188_p2), 87  }
   0xc   : > { %v2345_v12 = vsel (!%p188_p2), %vm280_vm1, 1.0, %v2985_v11  ;;  %v2344_v13 = vsel (!%p188_p2), %vm3063_vm2, 1.0, %v2985_v11  ;;  %vm3079_vm5 = vmpackc.low (!%p188_p2), %vm298_vm3, %vm3063_vm2  ;;  %s2997_s11 = smov (!%p188_p2), 97   ;;  %vm936_vm1 = vcmask (!%p188_p2), 855816   ;;  %s2998_s12 = smov (!%p188_p2), 126   ;;  %vm954_vm2 = vcmask (!%p188_p2), 1031168  }
   0xd   : > { %s3470_s19 = smov (!%p214_p3, %s2336_s19), 1  ;;  %v300_v14 = vsel %vm298_vm3, %v2345_v12, 0  ;;  %v411_v15 = vsub.f32 %v2344_v13, %v2344_v13  ;;  %v3073_v27 = vpack.c.bf16 %v2345_v12, %v2986_v26  ;;  %s2999_s13 = smov 117   ;;  %vm962_vm3 = vcmask 965632  }
   0xe   : > { %s2354_s20 = sshll.u32 %s3470_s19, 3  ;;  %v418_v16 = vsub.f32 %v300_v14, %v300_v14  ;;  %s3000_s14 = smov 118  }
   0xf   : > { %s218_s23 = scalar_lea.vmem %s3446_s0, %s2354_s20  ;;  %v412_v17 = vand.u32 4294901760, %v411_v15  ;;  %2753 = vmatprep.subr.msk.bf16.mxu1 %vm3079_vm5, %v3073_v27  ;;  %s3001_s15 = smov 108  }
  0x10   : > { %v230_v0 = vld [vmem:[%s218_s23] sm:$0xff]  ;;  %v419_v18 = vand.u32 4294901760, %v418_v16  ;;  %v2761_v32 = vpack.c.bf16 %v418_v16, %v411_v15  ;;  %2756 = vmatpush3.bf16.msk.msra.mxu1 %vm3079_vm5, %v3073_v27  ;;  %s3002_s16 = smov 116   ;;  %s3003_s17 = smov 107  }
  0x11   : > { %232 = vrot.lane.b32.xlu0 %v230_v0, %s2983_s24  ;;  %v413_v19 = vsub.f32 %v411_v15, %v412_v17  ;;  %s3004_s21 = smov 106   ;;  %s3005_s22 = smov 123  }
  0x12   : > { %v420_v20 = vsub.f32 %v418_v16, %v419_v18  ;;  %v2771_v34 = vpack.c.bf16 %v419_v18, %v412_v17 }
  0x13   : > { %v414_v21 = vand.u32 4294901760, %v413_v19 }
  0x14   : > { %v421_v22 = vand.u32 4294901760, %v420_v20 }
  0x16   : > { %v2757_v23 = vpack.c.bf16 %v421_v22, %v414_v21 }
  0x18   : > { %2758 = vmatprep.subr.bf16.mxu0 %v2757_v23 }
  0x19   : > { %2760 = vmatpush3.bf16.msra.mxu0 %v2757_v23 }
  0x1a   : > { %2762 = vmatprep.subr.bf16.mxu0 %v2761_v32 }
  0x83   : > { %v233_v1 = vpop.permute.xlu0 %232 }
  0x84   : > { %v234_v2 = vrot.slane %v233_v1, 4 }
  0x86   : > { %v236_v3 = vsel %vm235_vm0, %v233_v1, %v234_v2  ;;  %vm930_vm0 = vcmask 773816  }
  0x87   : > { %v238_v4 = vmax.f32 %v230_v0, %v236_v3 }
  0x89   : > { %240 = vrot.lane.b32.xlu0 %v238_v4, %s2984_s25 }
  0xfb   : > { %v241_v24 = vpop.permute.xlu0 %240 }
  0xfc   : > { %v242_v25 = vrot.slane %v241_v24, 4 }
  0xfe   : > { %v244_v28 = vsel %vm243_vm4, %v241_v24, %v242_v25 }
  0xff   : > { %v246_v29 = vmax.f32 %v238_v4, %v244_v28 }
 0x101   : > { %252 = vrot.lane.b32.xlu1 %v246_v29, %s2987_s26  ;;  %v248_v31 = vcombine.low %v246_v29, %v246_v29  ;;  %v258_v33 = vcombine.high %v246_v29, %v246_v29 }
 0x103   : > { %255 = vrot.lane.b32.xlu0 %v248_v31, %s2988_s27 }
 0x105   : > { %249 = vrot.lane.b32.xlu1 %v248_v31, %s2989_s28 }
 0x107   : > { %263 = vrot.lane.b32.xlu0 %v258_v33, %s2987_s26 }
 0x109   : > { %260 = vrot.lane.b32.xlu1 %v246_v29, %s2989_s28  ;;  %s3009_s28 = smov 16  }
 0x10d   : > { %266 = vrot.lane.b32.xlu1 %v246_v29, %s2988_s27 }
 0x173   : > { %v253_v35 = vpop.permute.xlu1 %252 }
 0x175   : > { %v256_v36 = vpop.permute.xlu0 %255 }
 0x176   : > { %v270_v37 = vsel %vm223_vm6, %v253_v35, %v256_v36 }
 0x177   : > { %v290_v38 = vsel %vm285_vm7, %v270_v37, 0  ;;  %v250_v39 = vpop.permute.xlu1 %249 }
 0x178   : > { %v379_v40 = vand.u32 4294901760, %v290_v38  ;;  %v269_v41 = vsel %vm223_vm6, %v246_v29, %v250_v39 }
 0x179   : > { %v287_v42 = vsel %vm285_vm7, %v269_v41, 0  ;;  %v264_v52 = vpop.permute.xlu0 %263 }
 0x17a   : > { %v380_v43 = vsub.f32 %v290_v38, %v379_v40  ;;  %v369_v44 = vand.u32 4294901760, %v287_v42 }
 0x17b   : > { %v261_v45 = vpop.permute.xlu1 %260 }
 0x17c   : > { %v370_v46 = vsub.f32 %v287_v42, %v369_v44  ;;  %v271_v47 = vsel %vm223_vm6, %v258_v33, %v261_v45  ;;  %2501 = vmatprep.mubr.f32.mxu0 %v369_v44  ;;  %v381_v48 = vand.u32 4294901760, %v380_v43 }
 0x17d   : > { %v293_v49 = vsel %vm285_vm7, %v271_v47, 0  ;;  %2502 = vmatmul.mubr.f32.vlgmr.msra.gmra.mrb[0].mxu0 %v379_v40 }
 0x17e   : > { %v389_v50 = vand.u32 4294901760, %v293_v49  ;;  %2764 = vmatpush3.bf16.msra.mxu0 %v2761_v32  ;;  %v371_v51 = vand.u32 4294901760, %v370_v46  ;;  %v382_v54 = vsub.f32 %v380_v43, %v381_v48 }
 0x17f   : > { %v267_v53 = vpop.permute.xlu1 %266  ;;  %2767 = vmatprep.subr.msk.bf16.mxu0 %vm3079_vm5, %v3073_v27 }
 0x180   : > { %v390_v55 = vsub.f32 %v293_v49, %v389_v50  ;;  %v272_v56 = vsel %vm223_vm6, %v264_v52, %v267_v53  ;;  %2504 = vmatprep.mubr.f32.mxu0 %v389_v50  ;;  %v372_v57 = vsub.f32 %v370_v46, %v371_v51  ;;  %v383_v62 = vand.u32 4294901760, %v382_v54 }
 0x181   : > { %v296_v58 = vsel %vm285_vm7, %v272_v56, 0  ;;  %vm978_vm7 = vcmask 949248  }
 0x182   : > { %v399_v59 = vand.u32 4294901760, %v296_v58  ;;  %v373_v60 = vand.u32 4294901760, %v372_v57  ;;  %v391_v61 = vand.u32 4294901760, %v390_v55 }
 0x184   : > { %v400_v63 = vsub.f32 %v296_v58, %v399_v59  ;;  %2491 = vmatprep.mubr.f32.mxu1 %v373_v60  ;;  %2505 = vmatmul.mubr.f32.gmra.mrb[2].mxu0 %v399_v59  ;;  %v392_v0 = vsub.f32 %v390_v55, %v391_v61 }
 0x185   : > { %2492 = vmatmul.mubr.f32.vlgmr.msra.gmra.mrb[0].mxu1 %v383_v62  ;;  %2511 = vmatprep.mubr.f32.mxu0 %v370_v46 }
 0x186   : > { %v393_v1 = vand.u32 4294901760, %v392_v0  ;;  %v401_v2 = vand.u32 4294901760, %v400_v63 }
 0x188   : > { %2494 = vmatprep.mubr.f32.mxu1 %v393_v1  ;;  %2512 = vmatmul.mubr.f32.vlgmr.msra.gmra.mrb[0].mxu0 %v380_v43  ;;  %v402_v3 = vsub.f32 %v400_v63, %v401_v2 }
 0x189   : > { %2514 = vmatprep.mubr.f32.mxu0 %v390_v55  ;;  %2770 = vmatpush3.bf16.msk.msra.mxu0 %vm3079_vm5, %v3073_v27 }
 0x18a   : > { %v403_v4 = vand.u32 4294901760, %v402_v3  ;;  %2772 = vmatprep.subr.bf16.mxu0 %v2771_v34  ;;  %v3008_v3 = vmov 0  }
 0x18b   : > { %2971 = vset.pattern.permute.xlu0 %v3008_v3  ;;  %2972 = vset.pattern.permute.xlu1 %v3008_v3 }
 0x18c   : > { %2495 = vmatmul.mubr.f32.gmra.mrb[2].mxu1 %v403_v4  ;;  %2515 = vmatmul.mubr.f32.gmra.mrb[2].mxu0 %v400_v63 }
 0x18d   : > { %2521 = vmatprep.mubr.f32.mxu0 %v371_v51 }
 0x190   : > { %2522 = vmatmul.mubr.f32.vlgmr.msra.gmra.mrb[0].mxu0 %v381_v48 }
 0x191   : > { %2524 = vmatprep.mubr.f32.mxu0 %v391_v61  ;;  %2774 = vmatpush3.bf16.msra.mxu0 %v2771_v34 }
 0x192   : > { %2777 = vmatprep.subr.msk.bf16.mxu0 %vm3079_vm5, %v3073_v27 }
 0x194   : > { %2525 = vmatmul.mubr.f32.gmra.mrb[2].mxu0 %v401_v2  ;;  %v1013_v2 = vld [vmem:[%s3448_s2] sm:$0xff] }
 0x195   : > { %2531 = vmatprep.mubr.f32.mxu0 %v369_v44 }
 0x198   : > { %2532 = vmatmul.mubr.f32.vlgmr.msra.gmra.mrb[0].mxu0 %v379_v40 }
 0x199   : > { %2534 = vmatprep.mubr.f32.mxu0 %v389_v50  ;;  %2780 = vmatpush3.bf16.msk.msra.mxu0 %vm3079_vm5, %v3073_v27  ;;  %vm970_vm5 = vcmask 957440  }
 0x19c   : > { %2535 = vmatmul.mubr.f32.gmra.mrb[2].mxu0 %v399_v59 }
 0x19d   : > { %2541 = vmatprep.mubr.f32.mxu0 %v369_v44 }
 0x1a0   : > { %2542 = vmatmul.mubr.f32.vlgmr.msra.gmra.mrb[0].mxu0 %v379_v40  ;;  %v3006_v40 = vmov 0.0|0.0  }
 0x1a1   : > { %2544 = vmatprep.mubr.f32.mxu0 %v389_v50  ;;  %2781 = vmatprep.subr.bf16.mxu1 %v3006_v40 }
 0x1a2   : > { %2841 = vmatprep.subr.bf16.mxu0 %v3006_v40 }
 0x1a4   : > { %2545 = vmatmul.mubr.f32.gmra.mrb[2].mxu0 %v399_v59 }
 0x258   : > { %v2493_v5 = vpop.f32.mrb[0].mxu1 }
 0x259   : > { %v375_v6 = vpop.f32.mrb[1].mxu1 }
 0x25f   : > { %v2496_v7 = vpop.f32.mrb[2].mxu1 }
 0x260   : > { %v395_v8 = vpop.f32.mrb[3].mxu1 }
 0x273   : > { %v2543_v9 = vpop.f32.mrb[0].mxu0 }
 0x274   : > { %v2889_v10 = vadd.f32 %v2543_v9, %v2493_v5  ;;  %v868_v12 = vpop.f32.mrb[1].mxu0  ;;  %v1012_v5 = vld [vmem:[%s3447_s1] sm:$0xff] }
 0x275   : > { %v2890_v13 = vadd.f32 %v868_v12, %v375_v6 }
 0x276   : > { %v908_v14 = vcombine.high %v2889_v10, %v2889_v10  ;;  %903 = vrot.lane.b32.xlu0 %v2889_v10, %s2990_s29 }
 0x277   : > { %v2546_v15 = vpop.f32.mrb[2].mxu0  ;;  %v896_v19 = vcombine.high %v2890_v13, %v2890_v13 }
 0x278   : > { %v2891_v16 = vadd.f32 %v2546_v15, %v2496_v7  ;;  %909 = vrot.lane.b32.xlu1 %v908_v14, %s2991_s30  ;;  %v880_v17 = vpop.f32.mrb[3].mxu0 }
 0x279   : > { %v2892_v18 = vadd.f32 %v880_v17, %v395_v8 }
 0x27a   : > { %891 = vrot.lane.b32.xlu0 %v2890_v13, %s2992_s6  ;;  %v932_v21 = vcombine.high %v2891_v16, %v2891_v16 }
 0x27b   : > { %v920_v20 = vcombine.high %v2892_v18, %v2892_v18 }
 0x27c   : > { %897 = vrot.lane.b32.xlu1 %v896_v19, %s2993_s7  ;;  %s3010_s7 = smov 115  }
 0x27e   : > { %915 = vrot.lane.b32.xlu0 %v2892_v18, %s2994_s8  ;;  %s3011_s8 = smov 111  }
 0x280   : > { %921 = vrot.lane.b32.xlu1 %v920_v20, %s2995_s9  ;;  %s3012_s9 = smov 113  }
 0x282   : > { %927 = vrot.lane.b32.xlu0 %v2891_v16, %s2996_s10  ;;  %s3013_s10 = smov 109  }
 0x284   : > { %933 = vrot.lane.b32.xlu1 %v932_v21, %s2997_s11  ;;  %s3014_s11 = smov 103  }
 0x2e8   : > { %v904_v22 = vpop.permute.xlu0 %903 }
 0x2ea   : > { %v910_v23 = vpop.permute.xlu1 %909 }
 0x2ec   : > { %v892_v24 = vpop.permute.xlu0 %891 }
 0x2ed   : > { %895 = vst.msk [vmem:[#allocation2] sm:$0xf] %vm894_vm10, %v892_v24  ;;  %vm3452_vm10 = vmmov 0  }
 0x2ee   : > { %v898_v25 = vpop.permute.xlu1 %897  ;;  %2557 = vmatprep.mubr.msk.f32.mxu1 %vm3452_vm10, %v2985_v11  ;;  %2685 = vmatprep.mubr.msk.f32.mxu0 %vm3452_vm10, %v2985_v11 }
 0x2ef   : > { %901 = vst.msk [vmem:[#allocation2] sm:$0xf] %vm900_vm11, %v898_v25  ;;  %vm1002_vm11 = vcmask 867328  }
 0x2f0   : > { %907 = vst.msk [vmem:[#allocation2] sm:$0xf] %vm906_vm12, %v904_v22  ;;  %v916_v26 = vpop.permute.xlu0 %915  ;;  %vm1057_vm12 = vcmask 293888  }
 0x2f1   : > { %913 = vst.msk [vmem:[#allocation2] sm:$0xf] %vm912_vm13, %v910_v23  ;;  %vm3454_vm13 = vcmask 1006592   ;;  %v1059_v7 = vsel %vm1057_vm12, %v1012_v5, 0  ;;  %vm1574_vm12 = vcmask 613912  }
 0x2f2   : > { %919 = vst.msk [vmem:[#allocation2] sm:$0xf] %vm918_vm14, %v916_v26  ;;  %v922_v27 = vpop.permute.xlu1 %921  ;;  %v3166_v10 = vand.u32 4294901760, %v1059_v7  ;;  %vm1566_vm14 = vcmask 285912  }
 0x2f3   : > { %925 = vst.msk [vmem:[#allocation2] sm:$0xf] %vm924_vm15, %v922_v27  ;;  %vm1568_vm15 = vcmask 367912  }
 0x2f4   : > { %v928_v28 = vpop.permute.xlu0 %927  ;;  %v3170_v17 = vsub.f32 %v1059_v7, %v3166_v10 }
 0x2f5   : > { %931 = vst.msk [vmem:[#allocation2] sm:$0xf] %vm930_vm0, %v928_v28  ;;  %vm1570_vm0 = vcmask 449912  }
 0x2f6   : > { %v934_v29 = vpop.permute.xlu1 %933  ;;  %v1135_v26 = vand.u32 4294901760, %v3170_v17 }
 0x2f7   : > { %937 = vst.msk [vmem:[#allocation2] sm:$0xf] %vm936_vm1, %v934_v29  ;;  %vm1572_vm1 = vcmask 531912  }
 0x2fe   : > { %v938_v30 = vld [vmem:[#allocation2] sm:$0xff] }
 0x2ff   : > { %950 = vrot.lane.b32.xlu0 %v938_v30, %s2998_s12  ;;  %945 = vrot.lane.b32.xlu1 %v938_v30, %s2984_s25  ;;  %v942_v31 = vcombine.low %v938_v30, %v938_v30  ;;  %v940_v32 = vcombine.high %v938_v30, %v938_v30 }
 0x303   : > { %966 = vrot.lane.b32.xlu0 %v938_v30, %s2999_s13  ;;  %960 = vrot.lane.b32.xlu1 %v938_v30, %s3000_s14 }
 0x307   : > { %982 = vrot.lane.b32.xlu0 %v938_v30, %s3001_s15  ;;  %976 = vrot.lane.b32.xlu1 %v938_v30, %s3002_s16 }
 0x30b   : > { %943 = vrot.lane.b32.xlu0 %v942_v31, %s2984_s25  ;;  %952 = vrot.lane.b32.xlu1 %v940_v32, %s2998_s12 }
 0x30f   : > { %958 = vrot.lane.b32.xlu0 %v942_v31, %s3000_s14  ;;  %968 = vrot.lane.b32.xlu1 %v940_v32, %s2999_s13 }
 0x313   : > { %974 = vrot.lane.b32.xlu0 %v942_v31, %s3002_s16  ;;  %984 = vrot.lane.b32.xlu1 %v940_v32, %s3001_s15 }
 0x317   : > { %990 = vrot.lane.b32.xlu0 %v942_v31, %s3003_s17  ;;  %992 = vrot.lane.b32.xlu1 %v938_v30, %s3003_s17 }
 0x31b   : > { %998 = vrot.lane.b32.xlu0 %v938_v30, %s3004_s21  ;;  %1000 = vrot.lane.b32.xlu1 %v940_v32, %s3004_s21 }
 0x371   : > { %v951_v33 = vpop.permute.xlu0 %950  ;;  %v946_v34 = vpop.permute.xlu1 %945 }
 0x372   : > { %v1005_v35 = vsel %vm223_vm6, %v940_v32, %v946_v34 }
 0x373   : > { %1029 = vrot.lane.b32.xlu1 %v1005_v35, %s3005_s22 }
 0x375   : > { %v967_v36 = vpop.permute.xlu0 %966  ;;  %v961_v37 = vpop.permute.xlu1 %960 }
 0x379   : > { %v983_v38 = vpop.permute.xlu0 %982  ;;  %v977_v39 = vpop.permute.xlu1 %976 }
 0x37d   : > { %v944_v41 = vpop.permute.xlu0 %943  ;;  %v953_v42 = vpop.permute.xlu1 %952 }
 0x37e   : > { %v947_v43 = vsel %vm243_vm4, %v944_v41, %v946_v34  ;;  %v1007_v44 = vsel %vm223_vm6, %v953_v42, %v961_v37  ;;  %v955_v48 = vsel %vm954_vm2, %v951_v33, %v953_v42  ;;  %v1136_v34 = vsub.f32 %v3170_v17, %v1135_v26 }
 0x37f   : > { %1033 = vrot.lane.b32.xlu1 %v1007_v44, %s3005_s22  ;;  %v1004_v45 = vsel %vm223_vm6, %v938_v30, %v947_v43 }
 0x380   : > { %1027 = vrot.lane.b32.xlu0 %v1004_v45, %s3005_s22 }
 0x381   : > { %v959_v46 = vpop.permute.xlu0 %958  ;;  %v969_v47 = vpop.permute.xlu1 %968 }
 0x382   : > { %v963_v49 = vsel %vm962_vm3, %v959_v46, %v961_v37  ;;  %v1009_v50 = vsel %vm223_vm6, %v969_v47, %v977_v39  ;;  %v971_v54 = vsel %vm970_vm5, %v967_v36, %v969_v47  ;;  %v1137_v46 = vand.u32 4294901760, %v1136_v34 }
 0x383   : > { %1037 = vrot.lane.b32.xlu1 %v1009_v50, %s3005_s22  ;;  %v1006_v51 = vsel %vm223_vm6, %v955_v48, %v963_v49 }
 0x384   : > { %1031 = vrot.lane.b32.xlu0 %v1006_v51, %s3005_s22 }
 0x385   : > { %v975_v52 = vpop.permute.xlu0 %974  ;;  %v985_v53 = vpop.permute.xlu1 %984 }
 0x386   : > { %v979_v55 = vsel %vm978_vm7, %v975_v52, %v977_v39  ;;  %v987_v59 = vsel %vm986_vm8, %v983_v38, %v985_v53 }
 0x387   : > { %v1008_v56 = vsel %vm223_vm6, %v971_v54, %v979_v55 }
 0x388   : > { %1035 = vrot.lane.b32.xlu0 %v1008_v56, %s3005_s22 }
 0x389   : > { %v991_v57 = vpop.permute.xlu0 %990  ;;  %v993_v58 = vpop.permute.xlu1 %992 }
 0x38a   : > { %v995_v60 = vsel %vm994_vm9, %v991_v57, %v993_v58  ;;  %v1011_v61 = vsel %vm223_vm6, %v985_v53, %v993_v58 }
 0x38b   : > { %1041 = vrot.lane.b32.xlu1 %v1011_v61, %s3005_s22  ;;  %v1010_v62 = vsel %vm223_vm6, %v987_v59, %v995_v60 }
 0x38c   : > { %1039 = vrot.lane.b32.xlu0 %v1010_v62, %s3005_s22 }
 0x38d   : > { %v999_v63 = vpop.permute.xlu0 %998  ;;  %v1001_v0 = vpop.permute.xlu1 %1000 }
 0x38e   : > { %v1003_v1 = vsel %vm1002_vm11, %v999_v63, %v1001_v0 }
 0x38f   : > { %1045 = vrot.lane.b32.xlu1 %v1001_v0, %s3005_s22 }
 0x390   : > { %1043 = vrot.lane.b32.xlu0 %v1003_v1, %s3005_s22 }
 0x394   : > { %1016 = vperm.xlu0 %2971, %v1013_v2  }
 0x3e5   : > { %v1030_v4 = vpop.permute.xlu1 %1029 }
 0x3f1   : > { %v1034_v8 = vpop.permute.xlu1 %1033 }
 0x3f2   : > { %v1028_v6 = vpop.permute.xlu0 %1027 }
 0x3f3   : > { %v1048_v9 = vsel %vm3454_vm13, %v1028_v6, %v1030_v4 }
 0x3f4   : > { %v1064_v12 = vand.u32 4294901760, %v1048_v9 }
 0x3f5   : > { %v1038_v16 = vpop.permute.xlu1 %1037 }
 0x3f6   : > { %v1032_v13 = vpop.permute.xlu0 %1031  ;;  %v3172_v18 = vsub.f32 %v1048_v9, %v1064_v12 }
 0x3f7   : > { %v1049_v14 = vsel %vm3454_vm13, %v1032_v13, %v1034_v8 }
 0x3f8   : > { %v1067_v15 = vand.u32 4294901760, %v1049_v14  ;;  %v1146_v27 = vand.u32 4294901760, %v3172_v18 }
 0x3fa   : > { %v3174_v19 = vpack.c.bf16 %v1067_v15, %v1064_v12  ;;  %v3176_v20 = vsub.f32 %v1049_v14, %v1067_v15  ;;  %v1036_v21 = vpop.permute.xlu0 %1035  ;;  %v1147_v35 = vsub.f32 %v3172_v18, %v1146_v27 }
 0x3fb   : > { %v1050_v22 = vsel %vm3454_vm13, %v1036_v21, %v1038_v16 }
 0x3fc   : > { %v1153_v23 = vand.u32 4294901760, %v3176_v20  ;;  %v1070_v24 = vand.u32 4294901760, %v1050_v22  ;;  %2783 = vmatpush3.bf16.msra.mxu1 %v3174_v19  ;;  %v1148_v47 = vand.u32 4294901760, %v1147_v35  ;;  %v2794_v58 = vpack.c.bf16 %v3176_v20, %v3172_v18 }
 0x3fd   : > { %v1042_v25 = vpop.permute.xlu1 %1041  ;;  %2784 = vmatprep.subr.bf16.mxu1 %v3006_v40 }
 0x3fe   : > { %v3184_v28 = vsub.f32 %v1050_v22, %v1070_v24  ;;  %v1040_v29 = vpop.permute.xlu0 %1039  ;;  %v1154_v31 = vsub.f32 %v3176_v20, %v1153_v23  ;;  %v2806_v60 = vpack.c.bf16 %v1153_v23, %v1146_v27 }
 0x3ff   : > { %v1051_v30 = vsel %vm3454_vm13, %v1040_v29, %v1042_v25 }
 0x400   : > { %v1073_v32 = vand.u32 4294901760, %v1051_v30  ;;  %v1160_v36 = vand.u32 4294901760, %v3184_v28  ;;  %v1155_v42 = vand.u32 4294901760, %v1154_v31  ;;  %v1627_v31 = vld [vmem:[%s3450_s4] sm:$0xff] }
 0x401   : > { %v1046_v33 = vpop.permute.xlu1 %1045 }
 0x402   : > { %v3193_v37 = vpack.c.bf16 %v1073_v32, %v1070_v24  ;;  %v1166_v38 = vsub.f32 %v1051_v30, %v1073_v32  ;;  %v1044_v39 = vpop.permute.xlu0 %1043  ;;  %v1161_v48 = vsub.f32 %v3184_v28, %v1160_v36  ;;  %v2788_v52 = vpack.c.bf16 %v1155_v42, %v1148_v47 }
 0x403   : > { %v1052_v41 = vsel %vm3454_vm13, %v1044_v39, %v1046_v33  ;;  %vm1580_vm13 = vcmask 859912  }
 0x404   : > { %v1167_v43 = vand.u32 4294901760, %v1166_v38  ;;  %v1061_v44 = vsel %vm223_vm6, %v1052_v41, 0  ;;  %2786 = vmatpush3.bf16.msra.mxu1 %v3193_v37  ;;  %v1162_v54 = vand.u32 4294901760, %v1161_v48  ;;  %v2797_v59 = vpack.c.bf16 %v1166_v38, %v3184_v28 }
 0x405   : > { %v1076_v45 = vand.u32 4294901760, %v1061_v44  ;;  %2555 = vmatprep.subr.mxu1 %v2985_v11  ;;  %vm228_vm6 = vcmask 261120  }
 0x406   : > { %v1168_v49 = vsub.f32 %v1166_v38, %v1167_v43  ;;  %v2809_v61 = vpack.c.bf16 %v1167_v43, %v1160_v36  ;;  %229 = vst.msk [vmem:[#allocation3 + $0x8] sm:$0xff] %vm228_vm6, %v2985_v11  ;;  %vm1576_vm6 = vcmask 695912  }
 0x407   : > { %v1173_v50 = vsub.f32 %v1061_v44, %v1076_v45 }
 0x408   : > { %v1169_v51 = vand.u32 4294901760, %v1168_v49  ;;  %2556 = vmatpush3.msra.mxu1 %v1076_v45 }
 0x409   : > { %v1174_v53 = vand.u32 4294901760, %v1173_v50  ;;  %2787 = vmatprep.subr.bf16.mxu1 %v3006_v40  ;;  %2558 = vmatmul.mubr.f32.vlgmr.msra.gmra.mrb[4].mxu1 %v1137_v46 }
 0x40a   : > { %2789 = vmatpush3.bf16.msra.mxu1 %v2788_v52  ;;  %2570 = vmatprep.mubr.msk.f32.mxu1 %vm3452_vm10, %v2985_v11  ;;  %v2791_v55 = vpack.c.bf16 %v1169_v51, %v1162_v54  ;;  %v1626_v54 = vld [vmem:[%s3449_s3] sm:$0xff] }
 0x40b   : > { %2790 = vmatprep.subr.bf16.mxu1 %v3006_v40  ;;  %v1175_v56 = vsub.f32 %v1173_v50, %v1174_v53 }
 0x40d   : > { %v1176_v57 = vand.u32 4294901760, %v1175_v56  ;;  %v1583_v3 = vld [vmem:[#allocation3 + $0x8] sm:$0xff] }
 0x40e   : > { %2792 = vmatpush3.bf16.msra.mxu1 %v2791_v55  ;;  %1588 = vrot.lane.b32.xlu0 %v1583_v3, %s2984_s25 }
 0x40f   : > { %2568 = vmatprep.subr.mxu1 %v2985_v11 }
 0x412   : > { %2569 = vmatpush3.msra.mxu1 %v1176_v57  ;;  %1593 = vrot.lane.b32.xlu0 %v1583_v3, %s2998_s12 }
 0x413   : > { %2793 = vmatprep.subr.bf16.mxu1 %v3006_v40  ;;  %2571 = vmatmul.mubr.f32.vlgmr.msra.gmra.mrb[4].mxu1 %v3166_v10  ;;  %v1017_v62 = vpop.permute.xlu0 %1016 }
 0x414   : > { %2795 = vmatpush3.bf16.msra.mxu1 %v2794_v58  ;;  %2583 = vmatprep.mubr.msk.f32.mxu1 %vm3452_vm10, %v2985_v11 }
 0x415   : > { %2796 = vmatprep.subr.bf16.mxu1 %v3006_v40 }
 0x416   : > { %1598 = vrot.lane.b32.xlu0 %v1583_v3, %s3000_s14 }
 0x418   : > { %2798 = vmatpush3.bf16.msra.mxu1 %v2797_v59 }
 0x419   : > { %2581 = vmatprep.subr.mxu1 %v2985_v11 }
 0x41a   : > { %1603 = vrot.lane.b32.xlu0 %v1583_v3, %s2999_s13 }
 0x41c   : > { %2582 = vmatpush3.msra.mxu1 %v1173_v50 }
 0x41d   : > { %2799 = vmatprep.subr.bf16.mxu1 %v3006_v40  ;;  %2584 = vmatmul.mubr.f32.vlgmr.msra.gmra.mrb[4].mxu1 %v3170_v17 }
 0x41e   : > { %2801 = vmatpush3.bf16.msra.mxu1 %v3174_v19  ;;  %2596 = vmatprep.mubr.msk.f32.mxu1 %vm3452_vm10, %v2985_v11 }
 0x41f   : > { %2802 = vmatprep.subr.bf16.mxu1 %v3006_v40  ;;  %1608 = vrot.lane.b32.xlu0 %v1583_v3, %s3002_s16 }
 0x422   : > { %2804 = vmatpush3.bf16.msra.mxu1 %v3193_v37 }
 0x423   : > { %2594 = vmatprep.subr.mxu1 %v2985_v11  ;;  %1613 = vrot.lane.b32.xlu0 %v1583_v3, %s3001_s15 }
 0x426   : > { %2595 = vmatpush3.msra.mxu1 %v1076_v45 }
 0x427   : > { %2805 = vmatprep.subr.bf16.mxu1 %v3006_v40  ;;  %2597 = vmatmul.mubr.f32.vlgmr.msra.gmra.mrb[4].mxu1 %v1135_v26 }
 0x428   : > { %2807 = vmatpush3.bf16.msra.mxu1 %v2806_v60  ;;  %2609 = vmatprep.mubr.msk.f32.mxu1 %vm3452_vm10, %v2985_v11 }
 0x429   : > { %2808 = vmatprep.subr.bf16.mxu1 %v3006_v40  ;;  %1618 = vrot.lane.b32.xlu0 %v1583_v3, %s3003_s17 }
 0x42c   : > { %2810 = vmatpush3.bf16.msra.mxu1 %v2809_v61 }
 0x42d   : > { %2607 = vmatprep.subr.mxu1 %v2985_v11  ;;  %1623 = vrot.lane.b32.xlu0 %v1583_v3, %s3004_s21 }
 0x430   : > { %2608 = vmatpush3.msra.mxu1 %v1174_v53 }
 0x431   : > { %2811 = vmatprep.subr.bf16.mxu1 %v3006_v40  ;;  %2610 = vmatmul.mubr.f32.vlgmr.msra.gmra.mrb[4].mxu1 %v3166_v10 }
 0x432   : > { %2813 = vmatpush3.bf16.msra.mxu1 %v3174_v19  ;;  %2622 = vmatprep.mubr.msk.f32.mxu1 %vm3452_vm10, %v2985_v11 }
 0x433   : > { %2814 = vmatprep.subr.bf16.mxu1 %v3006_v40  ;;  %1635 = vrot.lane.b32.xlu0 %v1583_v3, %s3005_s22 }
 0x436   : > { %2816 = vmatpush3.bf16.msra.mxu1 %v3193_v37 }
 0x437   : > { %2620 = vmatprep.subr.mxu1 %v2985_v11 }
 0x43a   : > { %2621 = vmatpush3.msra.mxu1 %v1076_v45 }
 0x43b   : > { %2623 = vmatmul.mubr.f32.vlgmr.msra.gmra.mrb[4].mxu1 %v3166_v10  ;;  %2817 = vmatprep.subr.bf16.mxu1 %v3006_v40 }
 0x43c   : > { %2643 = vmatprep.mubr.msk.f32.mxu1 %vm3452_vm10, %v2985_v11  ;;  %vm1578_vm10 = vcmask 777912  }
 0x480   : > { %v1589_v5 = vpop.permute.xlu0 %1588 }
 0x481   : > { %1639 = vrot.lane.b32.xlu0 %v1589_v5, %s3005_s22 }
 0x484   : > { %v1594_v6 = vpop.permute.xlu0 %1593 }
 0x485   : > { %1643 = vrot.lane.b32.xlu0 %v1594_v6, %s3005_s22 }
 0x488   : > { %v1599_v7 = vpop.permute.xlu0 %1598 }
 0x489   : > { %1647 = vrot.lane.b32.xlu0 %v1599_v7, %s3005_s22 }
 0x48c   : > { %v1604_v8 = vpop.permute.xlu0 %1603 }
 0x48d   : > { %1651 = vrot.lane.b32.xlu0 %v1604_v8, %s3005_s22 }
 0x491   : > { %v1609_v10 = vpop.permute.xlu0 %1608 }
 0x492   : > { %1655 = vrot.lane.b32.xlu0 %v1609_v10, %s3005_s22 }
 0x495   : > { %v1614_v12 = vpop.permute.xlu0 %1613 }
 0x496   : > { %1659 = vrot.lane.b32.xlu0 %v1614_v12, %s3005_s22 }
 0x49b   : > { %v1619_v13 = vpop.permute.xlu0 %1618 }
 0x49c   : > { %1663 = vrot.lane.b32.xlu0 %v1619_v13, %s3005_s22 }
 0x49f   : > { %v1624_v14 = vpop.permute.xlu0 %1623 }
 0x4a0   : > { %1667 = vrot.lane.b32.xlu0 %v1624_v14, %s3005_s22 }
 0x4a5   : > { %v1636_v32 = vpop.permute.xlu0 %1635 }
 0x4f3   : > { %v1640_v33 = vpop.permute.xlu0 %1639 }
 0x4f7   : > { %v1644_v34 = vpop.permute.xlu0 %1643 }
 0x4fb   : > { %v1648_v36 = vpop.permute.xlu0 %1647 }
 0x4ff   : > { %v1652_v43 = vpop.permute.xlu0 %1651 }
 0x504   : > { %v1656_v52 = vpop.permute.xlu0 %1655 }
 0x50e   : > { %v1557_v63 = vpop.f32.mrb[4].mxu1 }
 0x50f   : > { %v2893_v0 = vadd.f32 %v1557_v63, %v1017_v62  ;;  %v2624_v1 = vpop.f32.mrb[5].mxu1  ;;  %v1660_v63 = vpop.permute.xlu0 %1659 }
 0x511   : > { %v1561_v2 = vmax.f32 %v2893_v0, 0.0 }
 0x513   : > { %1563 = vrot.lane.b32.xlu1 %v1561_v2, %s3009_s28 }
 0x585   : > { %v1564_v4 = vpop.permute.xlu1 %1563 }
 0x586   : > { %1567 = vst.msk [vmem:[#allocation3] sm:$0xff] %vm1566_vm14, %v1564_v4  ;;  %vm3468_vm14 = vmmov 0  }
 0x587   : > { %1569 = vst.msk [vmem:[#allocation3] sm:$0xff] %vm1568_vm15, %v1564_v4  ;;  %vm2246_vm15 = vcmask 64512  }
 0x588   : > { %1571 = vst.msk [vmem:[#allocation3] sm:$0xff] %vm1570_vm0, %v1564_v4  ;;  %vm2251_vm0 = vcmask 130112  }
 0x589   : > { %1573 = vst.msk [vmem:[#allocation3] sm:$0xff] %vm1572_vm1, %v1564_v4  ;;  %vm2256_vm1 = vcmask 195712  }
 0x58a   : > { %1575 = vst.msk [vmem:[#allocation3] sm:$0xff] %vm1574_vm12, %v1564_v4  ;;  %vm2261_vm12 = vcmask 261312  }
 0x58b   : > { %1577 = vst.msk [vmem:[#allocation3] sm:$0xff] %vm1576_vm6, %v1564_v4  ;;  %vm2266_vm6 = vcmask 326912  }
 0x58c   : > { %1579 = vst.msk [vmem:[#allocation3] sm:$0xff] %vm1578_vm10, %v1564_v4 }
 0x58d   : > { %1581 = vst.msk [vmem:[#allocation3] sm:$0xff] %vm1580_vm13, %v1564_v4 }
 0x594   : > { %v1582_v9 = vld [vmem:[#allocation3] sm:$0xff] }
 0x595   : > { %1586 = vrot.lane.b32.xlu1 %v1582_v9, %s2984_s25 }
 0x599   : > { %1591 = vrot.lane.b32.xlu1 %v1582_v9, %s2998_s12  ;;  %s3015_s12 = smov 105  }
 0x59d   : > { %1596 = vrot.lane.b32.xlu1 %v1582_v9, %s3000_s14 }
 0x5a1   : > { %1601 = vrot.lane.b32.xlu1 %v1582_v9, %s2999_s13 }
 0x5a5   : > { %1606 = vrot.lane.b32.xlu1 %v1582_v9, %s3002_s16  ;;  %s222_s16 = scalar_lea.vmem %s3451_s5, %s2354_s20 }
 0x5a9   : > { %1611 = vrot.lane.b32.xlu1 %v1582_v9, %s3001_s15 }
 0x5ad   : > { %1616 = vrot.lane.b32.xlu1 %v1582_v9, %s3003_s17 }
 0x5b1   : > { %1621 = vrot.lane.b32.xlu1 %v1582_v9, %s3004_s21 }
 0x5b5   : > { %1633 = vrot.lane.b32.xlu1 %v1582_v9, %s3005_s22 }
 0x607   : > { %v1587_v15 = vpop.permute.xlu1 %1586 }
 0x608   : > { %v1590_v16 = vsel %vm243_vm4, %v1587_v15, %v1589_v5  ;;  %vm3459_vm4 = vcmask 1006592  }
 0x609   : > { %1637 = vrot.lane.b32.xlu1 %v1590_v16, %s3005_s22 }
 0x60b   : > { %v1592_v17 = vpop.permute.xlu1 %1591 }
 0x60c   : > { %v1595_v18 = vsel %vm954_vm2, %v1592_v17, %v1594_v6  ;;  %vm3460_vm2 = vmmov %vm3459_vm4 }
 0x60d   : > { %1641 = vrot.lane.b32.xlu1 %v1595_v18, %s3005_s22  ;;  %vm3465_vm10 = vmmov %vm3460_vm2 }
 0x60e   : > { %vm3467_vm13 = vmmov %vm3460_vm2 }
 0x60f   : > { %v1597_v19 = vpop.permute.xlu1 %1596 }
 0x610   : > { %v1600_v20 = vsel %vm962_vm3, %v1597_v19, %v1599_v7  ;;  %vm3461_vm3 = vmmov %vm3460_vm2 }
 0x611   : > { %1645 = vrot.lane.b32.xlu1 %v1600_v20, %s3005_s22 }
 0x613   : > { %v1602_v21 = vpop.permute.xlu1 %1601 }
 0x614   : > { %v1605_v22 = vsel %vm970_vm5, %v1602_v21, %v1604_v8  ;;  %vm3462_vm5 = vmmov %vm3460_vm2 }
 0x615   : > { %1649 = vrot.lane.b32.xlu1 %v1605_v22, %s3005_s22 }
 0x617   : > { %v1607_v23 = vpop.permute.xlu1 %1606 }
 0x618   : > { %v1610_v24 = vsel %vm978_vm7, %v1607_v23, %v1609_v10  ;;  %vm1687_vm7 = vcmask 588800   ;;  %v1664_v10 = vpop.permute.xlu0 %1663 }
 0x619   : > { %1653 = vrot.lane.b32.xlu1 %v1610_v24, %s3005_s22  ;;  %v1689_v60 = vsel %vm1687_vm7, %v1626_v54, 0 }
 0x61a   : > { %v3316_v0 = vand.u32 4294901760, %v1689_v60 }
 0x61b   : > { %v1612_v25 = vpop.permute.xlu1 %1611 }
 0x61c   : > { %v1615_v26 = vsel %vm986_vm8, %v1612_v25, %v1614_v12  ;;  %vm3463_vm8 = vmmov %vm3460_vm2  ;;  %v3321_v5 = vsub.f32 %v1689_v60, %v3316_v0  ;;  %v1668_v23 = vpop.permute.xlu0 %1667 }
 0x61d   : > { %1657 = vrot.lane.b32.xlu1 %v1615_v26, %s3005_s22 }
 0x61e   : > { %v1767_v16 = vand.u32 4294901760, %v3321_v5 }
 0x61f   : > { %v1617_v27 = vpop.permute.xlu1 %1616 }
 0x620   : > { %v1620_v28 = vsel %vm994_vm9, %v1617_v27, %v1619_v13  ;;  %vm3464_vm9 = vmmov %vm3460_vm2  ;;  %v1768_v25 = vsub.f32 %v3321_v5, %v1767_v16 }
 0x621   : > { %1661 = vrot.lane.b32.xlu1 %v1620_v28, %s3005_s22 }
 0x623   : > { %v1622_v29 = vpop.permute.xlu1 %1621 }
 0x624   : > { %v1625_v30 = vsel %vm1002_vm11, %v1622_v29, %v1624_v14  ;;  %vm3466_vm11 = vmmov %vm3460_vm2 }
 0x625   : > { %1665 = vrot.lane.b32.xlu1 %v1625_v30, %s3005_s22 }
 0x627   : > { %v1634_v35 = vpop.permute.xlu1 %1633 }
 0x628   : > { %v1669_v37 = vsel %vm3459_vm4, %v1634_v35, %v1636_v32  ;;  %vm2271_vm4 = vcmask 392512  }
 0x629   : > { %1630 = vperm.xlu1 %2972, %v1627_v31   ;;  %v1692_v38 = vand.u32 4294901760, %v1669_v37 }
 0x62b   : > { %v3289_v44 = vsub.f32 %v1669_v37, %v1692_v38 }
 0x62d   : > { %v1778_v15 = vand.u32 4294901760, %v3289_v44 }
 0x62f   : > { %v1779_v24 = vsub.f32 %v3289_v44, %v1778_v15 }
 0x631   : > { %v1780_v37 = vand.u32 4294901760, %v1779_v24 }
 0x67b   : > { %v1638_v39 = vpop.permute.xlu1 %1637 }
 0x67c   : > { %v1670_v41 = vsel %vm3460_vm2, %v1638_v39, %v1640_v33  ;;  %vm2276_vm2 = vcmask 458112  }
 0x67d   : > { %v1695_v42 = vand.u32 4294901760, %v1670_v41 }
 0x67f   : > { %v3291_v45 = vpack.c.bf16 %v1695_v42, %v1692_v38  ;;  %v3293_v46 = vsub.f32 %v1670_v41, %v1695_v42  ;;  %v1642_v47 = vpop.permute.xlu1 %1641  ;;  %v1769_v38 = vand.u32 4294901760, %v1768_v25 }
 0x680   : > { %v1671_v48 = vsel %vm3461_vm3, %v1642_v47, %v1644_v34  ;;  %vm2281_vm3 = vcmask 523712  }
 0x681   : > { %v2842_v49 = vpack.c.bf16 %v3293_v46, %v3289_v44  ;;  %2819 = vmatpush3.bf16.msra.mxu1 %v3291_v45  ;;  %v1698_v50 = vand.u32 4294901760, %v1671_v48  ;;  %v1785_v12 = vand.u32 4294901760, %v3293_v46 }
 0x682   : > { %2820 = vmatprep.subr.bf16.mxu1 %v3006_v40 }
 0x683   : > { %2843 = vmatpush3.bf16.msra.mxu0 %v2842_v49  ;;  %v1646_v51 = vpop.permute.xlu1 %1645  ;;  %v3305_v56 = vsub.f32 %v1671_v48, %v1698_v50  ;;  %v1786_v19 = vsub.f32 %v3293_v46, %v1785_v12 }
 0x684   : > { %v1672_v53 = vsel %vm3462_vm5, %v1646_v51, %v1648_v36  ;;  %2844 = vmatprep.subr.bf16.mxu0 %v3006_v40 }
 0x685   : > { %v1701_v55 = vand.u32 4294901760, %v1672_v53  ;;  %v1792_v26 = vand.u32 4294901760, %v3305_v56  ;;  %v1787_v31 = vand.u32 4294901760, %v1786_v19 }
 0x687   : > { %v3307_v57 = vpack.c.bf16 %v1701_v55, %v1698_v50  ;;  %v3309_v58 = vsub.f32 %v1672_v53, %v1701_v55  ;;  %v1650_v59 = vpop.permute.xlu1 %1649  ;;  %v1793_v39 = vsub.f32 %v3305_v56, %v1792_v26  ;;  %v2830_v42 = vpack.c.bf16 %v1787_v31, %v1780_v37 }
 0x688   : > { %v1673_v61 = vsel %vm3463_vm8, %v1650_v59, %v1652_v43 }
 0x689   : > { %v2845_v62 = vpack.c.bf16 %v3309_v58, %v3305_v56  ;;  %2822 = vmatpush3.bf16.msra.mxu1 %v3307_v57  ;;  %v1704_v1 = vand.u32 4294901760, %v1673_v61  ;;  %v1799_v21 = vand.u32 4294901760, %v3309_v58  ;;  %v1794_v50 = vand.u32 4294901760, %v1793_v39 }
 0x68a   : > { %2823 = vmatprep.subr.bf16.mxu1 %v3006_v40 }
 0x68b   : > { %2846 = vmatpush3.bf16.msra.mxu0 %v2845_v62  ;;  %v1654_v2 = vpop.permute.xlu1 %1653  ;;  %v3323_v6 = vsub.f32 %v1673_v61, %v1704_v1  ;;  %v1800_v33 = vsub.f32 %v3309_v58, %v1799_v21 }
 0x68c   : > { %v1674_v3 = vsel %vm3464_vm9, %v1654_v2, %v1656_v52  ;;  %2847 = vmatprep.subr.bf16.mxu0 %v3006_v40 }
 0x68d   : > { %v1707_v4 = vand.u32 4294901760, %v1674_v3  ;;  %v1806_v41 = vand.u32 4294901760, %v3323_v6  ;;  %v1801_v43 = vand.u32 4294901760, %v1800_v33 }
 0x68f   : > { %v3325_v7 = vpack.c.bf16 %v1707_v4, %v1704_v1  ;;  %v3327_v8 = vsub.f32 %v1674_v3, %v1707_v4  ;;  %v1658_v9 = vpop.permute.xlu1 %1657  ;;  %v1807_v51 = vsub.f32 %v3323_v6, %v1806_v41  ;;  %v2833_v55 = vpack.c.bf16 %v1801_v43, %v1794_v50 }
 0x690   : > { %v1675_v13 = vsel %vm3465_vm10, %v1658_v9, %v1660_v63  ;;  %v2869_v9 = vpack.c.bf16 %v1799_v21, %v1792_v26 }
 0x691   : > { %v2848_v14 = vpack.c.bf16 %v3327_v8, %v3323_v6  ;;  %2825 = vmatpush3.bf16.msra.mxu1 %v3325_v7  ;;  %v1710_v17 = vand.u32 4294901760, %v1675_v13  ;;  %v1813_v34 = vand.u32 4294901760, %v3327_v8  ;;  %v1808_v59 = vand.u32 4294901760, %v1807_v51 }
 0x692   : > { %2826 = vmatprep.subr.bf16.mxu1 %v3006_v40  ;;  %v2866_v6 = vpack.c.bf16 %v1785_v12, %v1778_v15 }
 0x693   : > { %2849 = vmatpush3.bf16.msra.mxu0 %v2848_v14  ;;  %v1662_v18 = vpop.permute.xlu1 %1661  ;;  %v3350_v27 = vsub.f32 %v1675_v13, %v1710_v17  ;;  %v1814_v47 = vsub.f32 %v3327_v8, %v1813_v34  ;;  %v2872_v44 = vpack.c.bf16 %v1813_v34, %v1806_v41 }
 0x694   : > { %v1676_v20 = vsel %vm3466_vm11, %v1662_v18, %v1664_v10  ;;  %2850 = vmatprep.subr.bf16.mxu0 %v3006_v40 }
 0x695   : > { %v1713_v22 = vand.u32 4294901760, %v1676_v20  ;;  %v1820_v52 = vand.u32 4294901760, %v3350_v27  ;;  %v1815_v53 = vand.u32 4294901760, %v1814_v47 }
 0x697   : > { %v3352_v28 = vpack.c.bf16 %v1713_v22, %v1710_v17  ;;  %v3354_v29 = vsub.f32 %v1676_v20, %v1713_v22  ;;  %v1666_v30 = vpop.permute.xlu1 %1665  ;;  %v1821_v60 = vsub.f32 %v3350_v27, %v1820_v52  ;;  %v2836_v63 = vpack.c.bf16 %v1815_v53, %v1808_v59 }
 0x698   : > { %v1677_v32 = vsel %vm3467_vm13, %v1666_v30, %v1668_v23 }
 0x699   : > { %v2851_v35 = vpack.c.bf16 %v3354_v29, %v3350_v27  ;;  %v3363_v36 = vand.u32 4294901760, %v1677_v32  ;;  %2828 = vmatpush3.bf16.msra.mxu1 %v3352_v28  ;;  %v1827_v48 = vand.u32 4294901760, %v3354_v29  ;;  %v1822_v1 = vand.u32 4294901760, %v1821_v60 }
 0x69a   : > { %2641 = vmatprep.subr.mxu1 %v2985_v11 }
 0x69b   : > { %2852 = vmatpush3.bf16.msra.mxu0 %v2851_v35  ;;  %v1833_v49 = vsub.f32 %v1677_v32, %v3363_v36  ;;  %v1828_v54 = vsub.f32 %v3354_v29, %v1827_v48  ;;  %v2875_v46 = vpack.c.bf16 %v1827_v48, %v1820_v52 }
 0x69c   : > { %2683 = vmatprep.subr.mxu0 %v2985_v11 }
 0x69d   : > { %2642 = vmatpush3.msra.mxu1 %v3363_v36  ;;  %v1829_v61 = vand.u32 4294901760, %v1828_v54  ;;  %v1834_v62 = vand.u32 4294901760, %v1833_v49 }
 0x69e   : > { %2829 = vmatprep.subr.bf16.mxu1 %v3006_v40  ;;  %2644 = vmatmul.mubr.f32.vlgmr.msra.gmra.mrb[6].mxu1 %v1769_v38 }
 0x69f   : > { %2831 = vmatpush3.bf16.msra.mxu1 %v2830_v42  ;;  %2684 = vmatpush3.msra.mxu0 %v1833_v49  ;;  %v1835_v2 = vsub.f32 %v1833_v49, %v1834_v62  ;;  %v2839_v3 = vpack.c.bf16 %v1829_v61, %v1822_v1 }
 0x6a0   : > { %2853 = vmatprep.subr.bf16.mxu0 %v3006_v40  ;;  %2686 = vmatmul.mubr.f32.vlgmr.msra.gmra.mrb[4].mxu0 %v3321_v5 }
 0x6a1   : > { %2855 = vmatpush3.bf16.msra.mxu0 %v3291_v45  ;;  %2832 = vmatprep.subr.bf16.mxu1 %v3006_v40  ;;  %v1836_v4 = vand.u32 4294901760, %v1835_v2 }
 0x6a2   : > { %2856 = vmatprep.subr.bf16.mxu0 %v3006_v40  ;;  %2706 = vmatprep.mubr.msk.f32.mxu0 %vm3468_vm14, %v2985_v11 }
 0x6a3   : > { %2834 = vmatpush3.bf16.msra.mxu1 %v2833_v55  ;;  %2664 = vmatprep.mubr.msk.f32.mxu1 %vm3468_vm14, %v2985_v11 }
 0x6a4   : > { %2835 = vmatprep.subr.bf16.mxu1 %v3006_v40 }
 0x6a5   : > { %2858 = vmatpush3.bf16.msra.mxu0 %v3307_v57 }
 0x6a6   : > { %2859 = vmatprep.subr.bf16.mxu0 %v3006_v40 }
 0x6a7   : > { %2837 = vmatpush3.bf16.msra.mxu1 %v2836_v63 }
 0x6a8   : > { %2838 = vmatprep.subr.bf16.mxu1 %v3006_v40  ;;  %v1631_v58 = vpop.permute.xlu1 %1630 }
 0x6a9   : > { %2861 = vmatpush3.bf16.msra.mxu0 %v3325_v7 }
 0x6aa   : > { %2862 = vmatprep.subr.bf16.mxu0 %v3006_v40 }
 0x6ab   : > { %2840 = vmatpush3.bf16.msra.mxu1 %v2839_v3 }
 0x6ac   : > { %2662 = vmatprep.subr.mxu1 %v2985_v11 }
 0x6ad   : > { %2864 = vmatpush3.bf16.msra.mxu0 %v3352_v28 }
 0x6ae   : > { %2704 = vmatprep.subr.mxu0 %v2985_v11 }
 0x6af   : > { %2663 = vmatpush3.msra.mxu1 %v1836_v4 }
 0x6b0   : > { %2665 = vmatmul.mubr.f32.vlgmr.msra.gmra.mrb[6].mxu1 %v3316_v0 }
 0x6b1   : > { %2705 = vmatpush3.msra.mxu0 %v3363_v36 }
 0x6b2   : > { %2865 = vmatprep.subr.bf16.mxu0 %v3006_v40  ;;  %2707 = vmatmul.mubr.f32.vlgmr.msra.gmra.mrb[4].mxu0 %v1767_v16 }
 0x6b3   : > { %2867 = vmatpush3.bf16.msra.mxu0 %v2866_v6  ;;  %2727 = vmatprep.mubr.msk.f32.mxu0 %vm3468_vm14, %v2985_v11 }
 0x6b4   : > { %2868 = vmatprep.subr.bf16.mxu0 %v3006_v40 }
 0x6b7   : > { %2870 = vmatpush3.bf16.msra.mxu0 %v2869_v9 }
 0x6b8   : > { %2871 = vmatprep.subr.bf16.mxu0 %v3006_v40 }
 0x6bb   : > { %2873 = vmatpush3.bf16.msra.mxu0 %v2872_v44 }
 0x6bc   : > { %2874 = vmatprep.subr.bf16.mxu0 %v3006_v40 }
 0x6bf   : > { %2876 = vmatpush3.bf16.msra.mxu0 %v2875_v46 }
 0x6c0   : > { %2725 = vmatprep.subr.mxu0 %v2985_v11 }
 0x6c3   : > { %2726 = vmatpush3.msra.mxu0 %v1834_v62 }
 0x6c4   : > { %2877 = vmatprep.subr.bf16.mxu0 %v3006_v40  ;;  %2728 = vmatmul.mubr.f32.vlgmr.msra.gmra.mrb[4].mxu0 %v3316_v0 }
 0x6c5   : > { %2879 = vmatpush3.bf16.msra.mxu0 %v3291_v45  ;;  %2748 = vmatprep.mubr.msk.f32.mxu0 %vm3468_vm14, %v2985_v11 }
 0x6c6   : > { %2880 = vmatprep.subr.bf16.mxu0 %v3006_v40 }
 0x6c9   : > { %2882 = vmatpush3.bf16.msra.mxu0 %v3307_v57 }
 0x6ca   : > { %2883 = vmatprep.subr.bf16.mxu0 %v3006_v40 }
 0x6cd   : > { %2885 = vmatpush3.bf16.msra.mxu0 %v3325_v7 }
 0x6ce   : > { %2886 = vmatprep.subr.bf16.mxu0 %v3006_v40 }
 0x6d1   : > { %2888 = vmatpush3.bf16.msra.mxu0 %v3352_v28 }
 0x6d2   : > { %2746 = vmatprep.subr.mxu0 %v2985_v11 }
 0x6d5   : > { %2747 = vmatpush3.msra.mxu0 %v3363_v36 }
 0x6d6   : > { %2749 = vmatmul.mubr.f32.vlgmr.msra.gmra.mrb[4].mxu0 %v3316_v0 }
 0x783   : > { %v1887_v45 = vpop.f32.mrb[6].mxu1 }
 0x784   : > { %v2666_v56 = vpop.f32.mrb[7].mxu1  ;;  %v2894_v5 = vadd.f32 %v1887_v45, %v1631_v58 }
 0x7a9   : > { %v2237_v8 = vpop.f32.mrb[4].mxu0 }
 0x7aa   : > { %v2895_v57 = vadd.f32 %v2894_v5, %v2237_v8  ;;  %v2750_v10 = vpop.f32.mrb[5].mxu0 }
 0x7ac   : > { %v2241_v12 = vmax.f32 %v2895_v57, 0.0 }
 0x7ae   : > { %2248 = vrot.lane.b32.xlu1 %v2241_v12, %s3010_s7  ;;  %2243 = vrot.lane.b32.xlu0 %v2241_v12, %s2999_s13 }
 0x7b2   : > { %2258 = vrot.lane.b32.xlu1 %v2241_v12, %s3011_s8  ;;  %2253 = vrot.lane.b32.xlu0 %v2241_v12, %s3012_s9 }
 0x7b6   : > { %2268 = vrot.lane.b32.xlu1 %v2241_v12, %s3003_s17  ;;  %2263 = vrot.lane.b32.xlu0 %v2241_v12, %s3013_s10 }
 0x7ba   : > { %2278 = vrot.lane.b32.xlu1 %v2241_v12, %s3014_s11  ;;  %2273 = vrot.lane.b32.xlu0 %v2241_v12, %s3015_s12 }
 0x820   : > { %v2249_v11 = vpop.permute.xlu1 %2248  ;;  %v2244_v40 = vpop.permute.xlu0 %2243 }
 0x821   : > { %2247 = vst.msk [vmem:[%s222_s16] sm:$0xff] %vm2246_vm15, %v2244_v40 }
 0x822   : > { %2252 = vst.msk [vmem:[%s222_s16] sm:$0xff] %vm2251_vm0, %v2249_v11 }
 0x824   : > { %v2259_v0 = vpop.permute.xlu1 %2258  ;;  %v2254_v7 = vpop.permute.xlu0 %2253 }
 0x825   : > { %2257 = vst.msk [vmem:[%s222_s16] sm:$0xff] %vm2256_vm1, %v2254_v7 }
 0x826   : > { %2262 = vst.msk [vmem:[%s222_s16] sm:$0xff] %vm2261_vm12, %v2259_v0 }
 0x828   : > { %v2269_v13 = vpop.permute.xlu1 %2268  ;;  %v2264_v14 = vpop.permute.xlu0 %2263 }
 0x829   : > { %2267 = vst.msk [vmem:[%s222_s16] sm:$0xff] %vm2266_vm6, %v2264_v14 }
 0x82a   : > { %2272 = vst.msk [vmem:[%s222_s16] sm:$0xff] %vm2271_vm4, %v2269_v13 }
 0x82c   : > { %v2279_v15 = vpop.permute.xlu1 %2278  ;;  %v2274_v16 = vpop.permute.xlu0 %2273 }
 0x82d   : > { %2277 = vst.msk [vmem:[%s222_s16] sm:$0xff] %vm2276_vm2, %v2274_v16 }
 0x82e   : > { %2282 = vst.msk [vmem:[%s222_s16] sm:$0xff] %vm2281_vm3, %v2279_v15 }
 0x82f PF: > { %s15_s18 = sadd.s32 1, %s2981_s18  }
 0x830   : > { %p12_p4 = scmp.ge.s32.totalorder %s15_s18, 4  }
 0x832   :  { %14 = sbr.rel (!%p12_p4) target bundleno = 1 (0x1), region = 70 }

</bundles_post_ra>
